<compile_context>
chip_gen: v6e
topology: v6e:2x2x1
jax: 0.10.0
libtpu: 0.0.40
codegen_flags: <defaults>
</compile_context>

<pallas_src>
import math
import functools

import jax
import jax.numpy as jnp
from jax.experimental import pallas as pl
from jax.experimental.pallas import tpu as pltpu

# ---------------- scaled-down BERT config ----------------
VOCAB = 100
TYPE_VOCAB = 2
MAX_POS = 32
HIDDEN = 128          # stands in for 768
HEADS = 2
HEAD_DIM = HIDDEN // HEADS
LAYERS = 2
INTER = 4 * HIDDEN
NUM_CLASSES = 9
CLS_PAD = 128         # lane-dense slab for the 9-class output
LN_EPS = 1e-12

# Preferred tile sizes (sized for bert-base; automatically shrunk for the demo).
TM_PREF = 256
TN_PREF = 768          # divides 768 / 2304 / 3072 and is 256-aligned
TK_PREF = 1024         # full-K contraction for H-sized (<=1024) reductions
FFN_CHUNK_PREF = 1024  # I-chunk size inside the fused FFN kernel
ATTN_TQ_PREF = 256     # query-tile rows per attention grid step


def _pick_vmem_limit():
    """Generation-dependent scoped-VMEM limit (96 MiB on 128-MiB parts,
    ~48 MiB on v7x's 64 MiB), with a conservative fallback."""
    try:
        cap = int(pltpu.get_tpu_info().vmem_capacity_bytes)
    except Exception:
        return 32 * 1024 * 1024
    if cap >= 100 * 1024 * 1024:          # v5e / v6e: 128 MiB physical
        return 96 * 1024 * 1024
    return min(48 * 1024 * 1024, (cap * 3) // 4)   # v7x: 64 MiB physical


VMEM_LIMIT = _pick_vmem_limit()


def _tile(dim, pref, base):
    """Largest tile <= pref that divides `dim` and is a multiple of `base`.
    Falls back to the full dim (always a legal block extent)."""
    if dim <= pref:
        return dim
    t = (pref // base) * base
    while t >= base:
        if dim % t == 0:
            return t
        t -= base
    return dim


def _ln_rows(x, gamma, beta, eps):
    """One-pass LayerNorm over the last axis.  x f32 [rows, H]; gamma/beta [1, H]."""
    h = x.shape[-1]
    inv_h = 1.0 / float(h)
    mu = jnp.sum(x, axis=-1, keepdims=True) * inv_h
    var = jnp.sum(x * x, axis=-1, keepdims=True) * inv_h - mu * mu
    var = jnp.maximum(var, 0.0)
    return (x - mu) * jax.lax.rsqrt(var + eps) * gamma + beta


# ---------------- tiled matmul + bias (+ optional act / residual+LayerNorm) ----------------
def _mm_epilogue(act, fuse_ln, x, r_ref, g_ref, be_ref, o_ref):
    if act == "gelu":
        # TODO(synk): HF bert-base uses exact erf GELU; tanh approx differs slightly.
        x = jax.nn.gelu(x, approximate=True)
    elif act == "tanh":
        x = jnp.tanh(x)
    if fuse_ln:
        x = x + r_ref[...].astype(jnp.float32)
        x = _ln_rows(x, g_ref[...], be_ref[...], LN_EPS)
    o_ref[...] = x.astype(o_ref.dtype)


def _matmul_bias_single_k_kernel(act, fuse_ln, *refs):
    # Whole contraction in one step: no accumulator scratch, no k-loop overhead.
    if fuse_ln:
        a_ref, w_ref, b_ref, r_ref, g_ref, be_ref, o_ref = refs
    else:
        a_ref, w_ref, b_ref, o_ref = refs
        r_ref = g_ref = be_ref = None
    x = jnp.dot(a_ref[...], w_ref[...],
                preferred_element_type=jnp.float32) + b_ref[...]
    _mm_epilogue(act, fuse_ln, x, r_ref, g_ref, be_ref, o_ref)


def _matmul_bias_multi_k_kernel(act, fuse_ln, *refs):
    if fuse_ln:
        a_ref, w_ref, b_ref, r_ref, g_ref, be_ref, o_ref, acc_ref = refs
    else:
        a_ref, w_ref, b_ref, o_ref, acc_ref = refs
        r_ref = g_ref = be_ref = None

    @pl.when(pl.program_id(2) == 0)
    def _():
        acc_ref[...] = jnp.zeros_like(acc_ref)

    acc_ref[...] += jnp.dot(a_ref[...], w_ref[...],
                            preferred_element_type=jnp.float32)

    @pl.when(pl.program_id(2) == pl.num_programs(2) - 1)
    def _():
        _mm_epilogue(act, fuse_ln, acc_ref[...] + b_ref[...],
                     r_ref, g_ref, be_ref, o_ref)


def matmul_bias(a, w, b, act=None, residual=None, ln_gamma=None, ln_beta=None,
                out_dtype=jnp.bfloat16):
    """a:[M,K] @ w:[K,N] + b:[N]; bf16 inputs, f32 accumulation.
    If `residual` is given, fuses (+residual -> LayerNorm(gamma, beta)) into the
    epilogue (requires the full N row in one tile)."""
    M, K = a.shape
    K2, N = w.shape
    assert K == K2
    fuse_ln = residual is not None
    tm = _tile(M, TM_PREF, 8)
    tn = _tile(N, TN_PREF, 128)
    tk = _tile(K, TK_PREF, 128)
    if fuse_ln:
        assert tn == N, "residual+LN fusion needs the full output row per tile"
    kt = K // tk
    grid = (M // tm, N // tn, kt)

    in_specs = [
        pl.BlockSpec((tm, tk), lambda i, j, k: (i, k)),
        pl.BlockSpec((tk, tn), lambda i, j, k: (k, j)),
        pl.BlockSpec((1, tn), lambda i, j, k: (0, j)),
    ]
    args = [a.astype(jnp.bfloat16), w.astype(jnp.bfloat16),
            b.reshape(1, N).astype(jnp.float32)]
    if fuse_ln:
        in_specs += [
            pl.BlockSpec((tm, N), lambda i, j, k: (i, 0)),
            pl.BlockSpec((1, N), lambda i, j, k: (0, 0)),
            pl.BlockSpec((1, N), lambda i, j, k: (0, 0)),
        ]
        args += [residual.astype(jnp.bfloat16),
                 ln_gamma.reshape(1, N).astype(jnp.float32),
                 ln_beta.reshape(1, N).astype(jnp.float32)]

    if kt == 1:
        kernel = functools.partial(_matmul_bias_single_k_kernel, act, fuse_ln)
        scratch = []
    else:
        kernel = functools.partial(_matmul_bias_multi_k_kernel, act, fuse_ln)
        scratch = [pltpu.VMEM((tm, tn), jnp.float32)]

    cost = pl.CostEstimate(
        flops=2 * M * N * K,
        transcendentals=(M * N if act in ("gelu", "tanh") else 0),
        bytes_accessed=2 * (M * K + K * N + M * N) + 4 * N
                       + (2 * M * N + 8 * N if fuse_ln else 0))
    return pl.pallas_call(
        kernel,
        grid=grid,
        out_shape=jax.ShapeDtypeStruct((M, N), out_dtype),
        in_specs=in_specs,
        out_specs=pl.BlockSpec((tm, tn), lambda i, j, k: (i, j)),
        scratch_shapes=scratch,
        compiler_params=pltpu.CompilerParams(
            dimension_semantics=("parallel", "parallel", "arbitrary"),
            vmem_limit_bytes=VMEM_LIMIT),
        cost_estimate=cost,
    )(*args)


# ---------------- fused FFN: GELU(x@i_w+i_b)@o_w+o_b -> +residual -> LayerNorm ----------------
def _ffn_kernel(chunk, n_chunks, x_ref, iw_ref, ib_ref, ow_ref, ob_ref,
                r_ref, g_ref, b_ref, o_ref):
    x = x_ref[...]                                            # (tm, H) bf16
    tm = x.shape[0]
    H = o_ref.shape[-1]
    acc = jnp.zeros((tm, H), jnp.float32)
    for c in range(n_chunks):                                 # static unroll over I-chunks
        lo, hi = c * chunk, (c + 1) * chunk
        h = jnp.dot(x, iw_ref[:, lo:hi],
                    preferred_element_type=jnp.float32) + ib_ref[:, lo:hi]
        # TODO(synk): exact erf GELU (HF default) vs tanh approximation.
        h = jax.nn.gelu(h, approximate=True)
        acc = acc + jnp.dot(h.astype(ow_ref.dtype), ow_ref[lo:hi, :],
                            preferred_element_type=jnp.float32)
    y = acc + ob_ref[...] + r_ref[...].astype(jnp.float32)
    y = _ln_rows(y, g_ref[...], b_ref[...], LN_EPS)
    o_ref[...] = y.astype(o_ref.dtype)


def ffn_fused(x, i_w, i_b, o_w, o_b, residual, ln_gamma, ln_beta,
              out_dtype=jnp.bfloat16):
    M, H = x.shape
    H2, I = i_w.shape
    assert H == H2 and o_w.shape == (I, H)
    tm = _tile(M, TM_PREF, 8)
    chunk = _tile(I, FFN_CHUNK_PREF, 128)
    n_chunks = I // chunk
    grid = (M // tm,)
    cost = pl.CostEstimate(
        flops=4 * M * H * I,
        transcendentals=M * I,
        bytes_accessed=2 * (3 * M * H + 2 * H * I) + 4 * (I + 3 * H))
    return pl.pallas_call(
        functools.partial(_ffn_kernel, chunk, n_chunks),
        grid=grid,
        out_shape=jax.ShapeDtypeStruct((M, H), out_dtype),
        in_specs=[
            pl.BlockSpec((tm, H), lambda i: (i, 0)),
            pl.BlockSpec((H, I), lambda i: (0, 0)),   # weights resident across M
            pl.BlockSpec((1, I), lambda i: (0, 0)),
            pl.BlockSpec((I, H), lambda i: (0, 0)),
            pl.BlockSpec((1, H), lambda i: (0, 0)),
            pl.BlockSpec((tm, H), lambda i: (i, 0)),  # residual
            pl.BlockSpec((1, H), lambda i: (0, 0)),   # LN gamma
            pl.BlockSpec((1, H), lambda i: (0, 0)),   # LN beta
        ],
        out_specs=pl.BlockSpec((tm, H), lambda i: (i, 0)),
        compiler_params=pltpu.CompilerParams(
            dimension_semantics=("parallel",),
            vmem_limit_bytes=VMEM_LIMIT),
        cost_estimate=cost,
    )(x.astype(jnp.bfloat16), i_w.astype(jnp.bfloat16),
      i_b.reshape(1, I).astype(jnp.float32),
      o_w.astype(jnp.bfloat16), o_b.reshape(1, H).astype(jnp.float32),
      residual.astype(jnp.bfloat16),
      ln_gamma.reshape(1, H).astype(jnp.float32),
      ln_beta.reshape(1, H).astype(jnp.float32))


# ---------------- fused embeddings sum + LayerNorm ----------------
def _embed_ln_kernel(w_ref, t_ref, p_ref, g_ref, b_ref, o_ref):
    x = (w_ref[0].astype(jnp.float32) + t_ref[0].astype(jnp.float32)
         + p_ref[...].astype(jnp.float32))
    o_ref[0] = _ln_rows(x, g_ref[...], b_ref[...], LN_EPS).astype(o_ref.dtype)


def embed_layernorm(word_g, type_g, pos, gamma, beta, out_dtype=jnp.bfloat16):
    """word_g/type_g: [B,S,H]; pos: [S,H].  Returns LayerNorm(sum) as [B,S,H]."""
    B, S, H = word_g.shape
    return pl.pallas_call(
        _embed_ln_kernel,
        grid=(B,),
        out_shape=jax.ShapeDtypeStruct((B, S, H), out_dtype),
        in_specs=[
            pl.BlockSpec((1, S, H), lambda b: (b, 0, 0)),
            pl.BlockSpec((1, S, H), lambda b: (b, 0, 0)),
            pl.BlockSpec((S, H), lambda b: (0, 0)),
            pl.BlockSpec((1, H), lambda b: (0, 0)),
            pl.BlockSpec((1, H), lambda b: (0, 0)),
        ],
        out_specs=pl.BlockSpec((1, S, H), lambda b: (b, 0, 0)),
        compiler_params=pltpu.CompilerParams(
            dimension_semantics=("parallel",),
            vmem_limit_bytes=VMEM_LIMIT),
    )(word_g, type_g, pos,
      gamma.reshape(1, H).astype(jnp.float32),
      beta.reshape(1, H).astype(jnp.float32))


# ---------------- multi-head self-attention (query-tiled, heads batched) ----------------
def _attn_kernel(scale, heads, head_dim, q_ref, k_ref, v_ref, m_ref, o_ref):
    tq = q_ref.shape[1]
    S = k_ref.shape[1]
    q = q_ref[0].reshape(tq, heads, head_dim)          # (tq, h, d) bf16
    k = k_ref[0].reshape(S, heads, head_dim)
    v = v_ref[0].reshape(S, heads, head_dim)
    bias = m_ref[0].astype(jnp.float32)                # (1, S) additive mask

    # All heads' QK^T in one batched dot (heads as batch dim): (h, tq, S)
    s = jax.lax.dot_general(q, k, (((2,), (2,)), ((1,), (1,))),
                            preferred_element_type=jnp.float32)
    s = s * scale + bias[None, :, :]
    s = s - jnp.max(s, axis=-1, keepdims=True)
    p = jnp.exp(s)
    # TODO(synk): approx reciprocal (EUP) introduces tiny error vs exact divide.
    p = p * pl.reciprocal(jnp.sum(p, axis=-1, keepdims=True), approx=True)
    # All heads' PV in one batched dot: (h, tq, d)
    ctx = jax.lax.dot_general(p.astype(v.dtype), v, (((2,), (0,)), ((0,), (1,))),
                              preferred_element_type=jnp.float32)
    out = jnp.transpose(ctx, (1, 0, 2)).reshape(tq, heads * head_dim)
    o_ref[0] = out.astype(o_ref.dtype)                 # lane-dense single store


def multi_head_attention(qkv, mask_bias, heads, head_dim):
    """qkv: [B, S, 3H] fused projections; mask_bias: [B, 1, S]. Returns [B, S, H]."""
    B, S, H3 = qkv.shape
    H = heads * head_dim
    assert H3 == 3 * H
    tq = _tile(S, ATTN_TQ_PREF, 8)
    grid = (B, S // tq)
    cost = pl.CostEstimate(
        flops=4 * B * heads * S * S * head_dim,
        transcendentals=B * heads * S * S,
        bytes_accessed=2 * B * S * (3 * H + H) + 4 * B * S)
    # The same qkv buffer is passed three times; the BlockSpec index_maps pick
    # the Q / K / V column blocks directly -- no XLA split/transpose round trips.
    return pl.pallas_call(
        functools.partial(_attn_kernel, 1.0 / math.sqrt(head_dim), heads, head_dim),
        grid=grid,
        out_shape=jax.ShapeDtypeStruct((B, S, H), jnp.bfloat16),
        in_specs=[
            pl.BlockSpec((1, tq, H), lambda b, qi: (b, qi, 0)),
            pl.BlockSpec((1, S, H), lambda b, qi: (b, 0, 1)),
            pl.BlockSpec((1, S, H), lambda b, qi: (b, 0, 2)),
            pl.BlockSpec((1, 1, S), lambda b, qi: (b, 0, 0)),
        ],
        out_specs=pl.BlockSpec((1, tq, H), lambda b, qi: (b, qi, 0)),
        compiler_params=pltpu.CompilerParams(
            dimension_semantics=("parallel", "parallel"),
            vmem_limit_bytes=VMEM_LIMIT),
        cost_estimate=cost,
    )(qkv, qkv, qkv, mask_bias)


# ---------------- fused pooler (tanh Linear on CLS) + classifier ----------------
def _head_kernel(cls_ref, pw_ref, pb_ref, cw_ref, cb_ref, o_ref):
    pooled = jnp.tanh(jnp.dot(cls_ref[...], pw_ref[...],
                              preferred_element_type=jnp.float32) + pb_ref[...])
    # TODO(synk): Dropout(0.3) between pooler and classifier is identity in eval mode.
    logits = jnp.dot(pooled.astype(cw_ref.dtype), cw_ref[...],
                     preferred_element_type=jnp.float32) + cb_ref[...]
    o_ref[...] = logits


def pooler_classifier(cls_tok, pool_w, pool_b, cls_w_pad, cls_b_pad, num_classes):
    B, H = cls_tok.shape
    NP = cls_w_pad.shape[1]
    out = pl.pallas_call(
        _head_kernel,
        grid=(1,),
        out_shape=jax.ShapeDtypeStruct((B, NP), jnp.float32),
        in_specs=[
            pl.BlockSpec((B, H), lambda i: (0, 0)),
            pl.BlockSpec((H, H), lambda i: (0, 0)),
            pl.BlockSpec((1, H), lambda i: (0, 0)),
            pl.BlockSpec((H, NP), lambda i: (0, 0)),
            pl.BlockSpec((1, NP), lambda i: (0, 0)),
        ],
        out_specs=pl.BlockSpec((B, NP), lambda i: (0, 0)),
        compiler_params=pltpu.CompilerParams(vmem_limit_bytes=VMEM_LIMIT),
    )(cls_tok.astype(jnp.bfloat16), pool_w.astype(jnp.bfloat16),
      pool_b.reshape(1, H).astype(jnp.float32), cls_w_pad, cls_b_pad)
    return out[:, :num_classes]


# ---------------- parameter init (deterministic, stands in for pretrained) ----------------
def init_params(key):
    # TODO(synk): no clean way to load the 'bert-base-uncased' checkpoint in-script;
    # deterministic random weights stand in for the pretrained BertModel.
    def nrm(k, shape, scale=0.02, dtype=jnp.bfloat16):
        return (scale * jax.random.normal(k, shape, jnp.float32)).astype(dtype)

    keys = iter(jax.random.split(key, 8 + LAYERS * 16 + 8))
    p = {
        "word_emb": nrm(next(keys), (VOCAB, HIDDEN), dtype=jnp.float32),
        "pos_emb": nrm(next(keys), (MAX_POS, HIDDEN), dtype=jnp.float32),
        "type_emb": nrm(next(keys), (TYPE_VOCAB, HIDDEN), dtype=jnp.float32),
        "emb_ln_g": jnp.ones((HIDDEN,), jnp.float32),
        "emb_ln_b": jnp.zeros((HIDDEN,), jnp.float32),
        "layers": [],
    }
    for _ in range(LAYERS):
        # weights stored [in, out] (== torch Linear weight transposed), bf16
        q_w = nrm(next(keys), (HIDDEN, HIDDEN))
        k_w = nrm(next(keys), (HIDDEN, HIDDEN))
        v_w = nrm(next(keys), (HIDDEN, HIDDEN))
        layer = {
            "qkv_w": jnp.concatenate([q_w, k_w, v_w], axis=1),   # fused [H, 3H]
            "qkv_b": jnp.zeros((3 * HIDDEN,), jnp.float32),
            "ao_w": nrm(next(keys), (HIDDEN, HIDDEN)),
            "ao_b": jnp.zeros((HIDDEN,), jnp.float32),
            "attn_ln_g": jnp.ones((HIDDEN,), jnp.float32),
            "attn_ln_b": jnp.zeros((HIDDEN,), jnp.float32),
            "i_w": nrm(next(keys), (HIDDEN, INTER)),
            "i_b": jnp.zeros((INTER,), jnp.float32),
            "o_w": nrm(next(keys), (INTER, HIDDEN)),
            "o_b": jnp.zeros((HIDDEN,), jnp.float32),
            "out_ln_g": jnp.ones((HIDDEN,), jnp.float32),
            "out_ln_b": jnp.zeros((HIDDEN,), jnp.float32),
        }
        p["layers"].append(layer)
    p["pool_w"] = nrm(next(keys), (HIDDEN, HIDDEN))
    p["pool_b"] = jnp.zeros((HIDDEN,), jnp.float32)
    # classifier Linear(H, 9), pre-padded to a lane-dense 128-wide slab
    cls_w = nrm(next(keys), (HIDDEN, NUM_CLASSES), dtype=jnp.float32)
    cls_b = jnp.zeros((NUM_CLASSES,), jnp.float32)
    p["cls_w_pad"] = jnp.zeros((HIDDEN, CLS_PAD), jnp.bfloat16).at[
        :, :NUM_CLASSES].set(cls_w.astype(jnp.bfloat16))
    p["cls_b_pad"] = jnp.zeros((1, CLS_PAD), jnp.float32).at[
        :, :NUM_CLASSES].set(cls_b)
    return p


# ---------------- forward pass (== BERTClass.forward, eval mode) ----------------
def bert_class_forward(params, ids, mask, token_type_ids):
    B, S = ids.shape
    M = B * S

    # --- embeddings: gathers in XLA, sum + LayerNorm fused in Pallas ---
    word_g = params["word_emb"][ids]                                  # [B,S,H] f32
    type_g = params["type_emb"][token_type_ids]                       # [B,S,H] f32
    pos = params["pos_emb"][:S]                                       # [S,H]  f32
    x = embed_layernorm(word_g, type_g, pos,
                        params["emb_ln_g"], params["emb_ln_b"])       # [B,S,H] bf16
    x = x.reshape(M, HIDDEN)
    # TODO(synk): embedding/attention/hidden dropouts are identity here (eval mode).

    # additive attention mask: 0 where attended, -10000 where padded
    mask_bias = ((1.0 - mask.astype(jnp.float32)) * -10000.0).reshape(B, 1, S)

    # --- transformer encoder layers ---
    for layer in params["layers"]:
        qkv = matmul_bias(x, layer["qkv_w"], layer["qkv_b"])          # [M, 3H]
        ctx = multi_head_attention(qkv.reshape(B, S, 3 * HIDDEN),
                                   mask_bias, HEADS, HEAD_DIM)        # [B, S, H]
        # attention output projection + residual + LayerNorm, fused epilogue
        x = matmul_bias(ctx.reshape(M, HIDDEN), layer["ao_w"], layer["ao_b"],
                        residual=x,
                        ln_gamma=layer["attn_ln_g"], ln_beta=layer["attn_ln_b"])
        # GELU-FFN + residual + LayerNorm, single fused kernel
        x = ffn_fused(x, layer["i_w"], layer["i_b"], layer["o_w"], layer["o_b"],
                      residual=x,
                      ln_gamma=layer["out_ln_g"], ln_beta=layer["out_ln_b"])

    # --- pooler (output_1 of BertModel) + Dropout(eval) + Linear(H, 9), fused ---
    cls_tok = x.reshape(B, S, HIDDEN)[:, 0, :]                        # [B, H]
    logits = pooler_classifier(cls_tok, params["pool_w"], params["pool_b"],
                               params["cls_w_pad"], params["cls_b_pad"],
                               NUM_CLASSES)
    return logits                                                     # [B, 9] f32


if __name__ == "__main__":
    B, S = 2, 8
    key = jax.random.PRNGKey(0)
    k_par, k_ids, k_tt = jax.random.split(key, 3)

    params = init_params(k_par)
    ids = jax.random.randint(k_ids, (B, S), 0, VOCAB, dtype=jnp.int32)
    mask = jnp.ones((B, S), dtype=jnp.int32)
    token_type_ids = jax.random.randint(k_tt, (B, S), 0, TYPE_VOCAB, dtype=jnp.int32)

    fwd = jax.jit(bert_class_forward)
    logits = jax.block_until_ready(fwd(params, ids, mask, token_type_ids))
    assert logits.shape == (B, NUM_CLASSES)
    assert bool(jnp.all(jnp.isfinite(logits)))
    print("KERNEL_OK")
</pallas_src>

<mosaic_0001>
module attributes {stable_mosaic.version = 11 : i64} {
  func.func @_embed_ln_kernel(%arg0: i32, %arg1: memref<1x8x128xf32, #tpu.memory_space<vmem>>, %arg2: memref<1x8x128xf32, #tpu.memory_space<vmem>>, %arg3: memref<8x128xf32, #tpu.memory_space<vmem>>, %arg4: memref<1x128xf32, #tpu.memory_space<vmem>>, %arg5: memref<1x128xf32, #tpu.memory_space<vmem>>, %arg6: memref<1x8x128xbf16, #tpu.memory_space<vmem>>) attributes {dimension_semantics = [#tpu.dimension_semantics<parallel>], iteration_bounds = array<i64: 2>, scalar_prefetch = 0 : i64, scratch_operands = 0 : i64, tpu.core_type = #tpu.core_type<tc>, window_params = [{transform_indices = @transform_0, window_bounds = array<i64: 1, 8, 128>}, {transform_indices = @transform_1, window_bounds = array<i64: 1, 8, 128>}, {pipeline_mode = #tpu.pipeline_mode<synchronous>, transform_indices = @transform_2, window_bounds = array<i64: 8, 128>}, {pipeline_mode = #tpu.pipeline_mode<synchronous>, transform_indices = @transform_3, window_bounds = array<i64: 1, 128>}, {pipeline_mode = #tpu.pipeline_mode<synchronous>, transform_indices = @transform_4, window_bounds = array<i64: 1, 128>}, {transform_indices = @transform_5, window_bounds = array<i64: 1, 8, 128>}]} {
    %c0 = arith.constant 0 : index
    %c0_0 = arith.constant 0 : index
    %c0_1 = arith.constant 0 : index
    %0 = vector.load %arg1[%c0, %c0_0, %c0_1] : memref<1x8x128xf32, #tpu.memory_space<vmem>>, vector<1x8x128xf32>
    %1 = vector.shape_cast %0 : vector<1x8x128xf32> to vector<8x128xf32>
    %c0_2 = arith.constant 0 : index
    %c0_3 = arith.constant 0 : index
    %c0_4 = arith.constant 0 : index
    %2 = vector.load %arg2[%c0_2, %c0_3, %c0_4] : memref<1x8x128xf32, #tpu.memory_space<vmem>>, vector<1x8x128xf32>
    %3 = vector.shape_cast %2 : vector<1x8x128xf32> to vector<8x128xf32>
    %4 = arith.addf %1, %3 : vector<8x128xf32>
    %c0_5 = arith.constant 0 : index
    %c0_6 = arith.constant 0 : index
    %5 = vector.load %arg3[%c0_5, %c0_6] : memref<8x128xf32, #tpu.memory_space<vmem>>, vector<8x128xf32>
    %6 = arith.addf %4, %5 : vector<8x128xf32>
    %c0_7 = arith.constant 0 : index
    %c0_8 = arith.constant 0 : index
    %7 = vector.load %arg4[%c0_7, %c0_8] : memref<1x128xf32, #tpu.memory_space<vmem>>, vector<1x128xf32>
    %c0_9 = arith.constant 0 : index
    %c0_10 = arith.constant 0 : index
    %8 = vector.load %arg5[%c0_9, %c0_10] : memref<1x128xf32, #tpu.memory_space<vmem>>, vector<1x128xf32>
    %cst = arith.constant dense<0.000000e+00> : vector<8xf32>
    %9 = vector.multi_reduction <add>, %6, %cst [1] : vector<8x128xf32> to vector<8xf32>
    %10 = vector.shape_cast %9 : vector<8xf32> to vector<8x1xf32>
    %cst_11 = arith.constant 7.812500e-03 : f32
    %11 = vector.broadcast %cst_11 : f32 to vector<8x1xf32>
    %12 = arith.mulf %10, %11 : vector<8x1xf32>
    %13 = arith.mulf %6, %6 : vector<8x128xf32>
    %cst_12 = arith.constant dense<0.000000e+00> : vector<8xf32>
    %14 = vector.multi_reduction <add>, %13, %cst_12 [1] : vector<8x128xf32> to vector<8xf32>
    %15 = vector.shape_cast %14 : vector<8xf32> to vector<8x1xf32>
    %cst_13 = arith.constant 7.812500e-03 : f32
    %16 = vector.broadcast %cst_13 : f32 to vector<8x1xf32>
    %17 = arith.mulf %15, %16 : vector<8x1xf32>
    %18 = arith.mulf %12, %12 : vector<8x1xf32>
    %19 = arith.subf %17, %18 : vector<8x1xf32>
    %cst_14 = arith.constant 0.000000e+00 : f32
    %20 = vector.broadcast %cst_14 : f32 to vector<8x1xf32>
    %21 = arith.maximumf %19, %20 : vector<8x1xf32>
    %22 = vector.broadcast %12 : vector<8x1xf32> to vector<8x128xf32>
    %23 = arith.subf %6, %22 : vector<8x128xf32>
    %cst_15 = arith.constant 9.99999996E-13 : f32
    %24 = vector.broadcast %cst_15 : f32 to vector<8x1xf32>
    %25 = arith.addf %21, %24 : vector<8x1xf32>
    %26 = math.rsqrt %25 : vector<8x1xf32>
    %27 = vector.broadcast %26 : vector<8x1xf32> to vector<8x128xf32>
    %28 = arith.mulf %23, %27 : vector<8x128xf32>
    %29 = vector.broadcast %7 : vector<1x128xf32> to vector<8x128xf32>
    %30 = arith.mulf %28, %29 : vector<8x128xf32>
    %31 = vector.broadcast %8 : vector<1x128xf32> to vector<8x128xf32>
    %32 = arith.addf %30, %31 : vector<8x128xf32>
    %33 = arith.truncf %32 : vector<8x128xf32> to vector<8x128xbf16>
    %c0_16 = arith.constant 0 : index
    %c0_17 = arith.constant 0 : index
    %c0_18 = arith.constant 0 : index
    %34 = vector.load %arg6[%c0_16, %c0_17, %c0_18] : memref<1x8x128xbf16, #tpu.memory_space<vmem>>, vector<1x8x128xbf16>
    %35 = vector.shape_cast %34 : vector<1x8x128xbf16> to vector<8x128xbf16>
    %36 = vector.shape_cast %33 : vector<8x128xbf16> to vector<1x8x128xbf16>
    tpu.vector_store %arg6[%c0_16, %c0_17, %c0_18], %36 {strides = array<i32>} : memref<1x8x128xbf16, #tpu.memory_space<vmem>>, vector<1x8x128xbf16>,
    return
  }
  func.func @transform_0(%arg0: i32) -> (i32, i32, i32) {
    %c0_i32 = arith.constant 0 : i32
    %c0_i32_0 = arith.constant 0 : i32
    %c0_i32_1 = arith.constant 0 : i32
    return %arg0, %c0_i32, %c0_i32_0 : i32, i32, i32
  }
  func.func @transform_1(%arg0: i32) -> (i32, i32, i32) {
    %c0_i32 = arith.constant 0 : i32
    %c0_i32_0 = arith.constant 0 : i32
    %c0_i32_1 = arith.constant 0 : i32
    return %arg0, %c0_i32, %c0_i32_0 : i32, i32, i32
  }
  func.func @transform_2(%arg0: i32) -> (i32, i32) {
    %c0_i32 = arith.constant 0 : i32
    %c0_i32_0 = arith.constant 0 : i32
    %c0_i32_1 = arith.constant 0 : i32
    return %c0_i32, %c0_i32_0 : i32, i32
  }
  func.func @transform_3(%arg0: i32) -> (i32, i32) {
    %c0_i32 = arith.constant 0 : i32
    %c0_i32_0 = arith.constant 0 : i32
    %c0_i32_1 = arith.constant 0 : i32
    return %c0_i32, %c0_i32_0 : i32, i32
  }
  func.func @transform_4(%arg0: i32) -> (i32, i32) {
    %c0_i32 = arith.constant 0 : i32
    %c0_i32_0 = arith.constant 0 : i32
    %c0_i32_1 = arith.constant 0 : i32
    return %c0_i32, %c0_i32_0 : i32, i32
  }
  func.func @transform_5(%arg0: i32) -> (i32, i32, i32) {
    %c0_i32 = arith.constant 0 : i32
    %c0_i32_0 = arith.constant 0 : i32
    %c0_i32_1 = arith.constant 0 : i32
    return %arg0, %c0_i32, %c0_i32_0 : i32, i32, i32
  }
}

module attributes {stable_mosaic.version = 11 : i64} {
  func.func @_matmul_bias_single_k_kernel(%arg0: i32, %arg1: i32, %arg2: i32, %arg3: memref<16x128xbf16, #tpu.memory_space<vmem>>, %arg4: memref<128x128xbf16, #tpu.memory_space<vmem>>, %arg5: memref<1x128xf32, #tpu.memory_space<vmem>>, %arg6: memref<16x128xbf16, #tpu.memory_space<vmem>>, %arg7: memref<1x128xf32, #tpu.memory_space<vmem>>, %arg8: memref<1x128xf32, #tpu.memory_space<vmem>>, %arg9: memref<16x128xbf16, #tpu.memory_space<vmem>>) attributes {dimension_semantics = [#tpu.dimension_semantics<parallel>, #tpu.dimension_semantics<parallel>, #tpu.dimension_semantics<arbitrary>], iteration_bounds = array<i64: 1, 1, 1>, scalar_prefetch = 0 : i64, scratch_operands = 0 : i64, tpu.core_type = #tpu.core_type<tc>, window_params = [{transform_indices = @transform_0, window_bounds = array<i64: 16, 128>}, {transform_indices = @transform_1, window_bounds = array<i64: 128, 128>}, {transform_indices = @transform_2, window_bounds = array<i64: 1, 128>}, {transform_indices = @transform_3, window_bounds = array<i64: 16, 128>}, {pipeline_mode = #tpu.pipeline_mode<synchronous>, transform_indices = @transform_4, window_bounds = array<i64: 1, 128>}, {pipeline_mode = #tpu.pipeline_mode<synchronous>, transform_indices = @transform_5, window_bounds = array<i64: 1, 128>}, {transform_indices = @transform_6, window_bounds = array<i64: 16, 128>}]} {
    %c0 = arith.constant 0 : index
    %c0_0 = arith.constant 0 : index
    %0 = vector.load %arg3[%c0, %c0_0] : memref<16x128xbf16, #tpu.memory_space<vmem>>, vector<16x128xbf16>
    %c0_1 = arith.constant 0 : index
    %c0_2 = arith.constant 0 : index
    %1 = vector.load %arg4[%c0_1, %c0_2] : memref<128x128xbf16, #tpu.memory_space<vmem>>, vector<128x128xbf16>
    %cst = arith.constant dense<0.000000e+00> : vector<16x128xf32>
    %2 = tpu.matmul %0, %1, %cst {dimension_numbers = #tpu.dot_dimension_numbers<[1], [0], [0], [1], [0, 0, 1, 1], [], []>} : vector<16x128xbf16>, vector<128x128xbf16>, vector<16x128xf32> -> vector<16x128xf32>
    %c0_3 = arith.constant 0 : index
    %c0_4 = arith.constant 0 : index
    %3 = vector.load %arg5[%c0_3, %c0_4] : memref<1x128xf32, #tpu.memory_space<vmem>>, vector<1x128xf32>
    %4 = vector.broadcast %3 : vector<1x128xf32> to vector<16x128xf32>
    %5 = arith.addf %2, %4 : vector<16x128xf32>
    %c0_5 = arith.constant 0 : index
    %c0_6 = arith.constant 0 : index
    %6 = vector.load %arg6[%c0_5, %c0_6] : memref<16x128xbf16, #tpu.memory_space<vmem>>, vector<16x128xbf16>
    %7 = arith.extf %6 : vector<16x128xbf16> to vector<16x128xf32>
    %8 = arith.addf %5, %7 : vector<16x128xf32>
    %c0_7 = arith.constant 0 : index
    %c0_8 = arith.constant 0 : index
    %9 = vector.load %arg7[%c0_7, %c0_8] : memref<1x128xf32, #tpu.memory_space<vmem>>, vector<1x128xf32>
    %c0_9 = arith.constant 0 : index
    %c0_10 = arith.constant 0 : index
    %10 = vector.load %arg8[%c0_9, %c0_10] : memref<1x128xf32, #tpu.memory_space<vmem>>, vector<1x128xf32>
    %cst_11 = arith.constant dense<0.000000e+00> : vector<16xf32>
    %11 = vector.multi_reduction <add>, %8, %cst_11 [1] : vector<16x128xf32> to vector<16xf32>
    %12 = vector.shape_cast %11 : vector<16xf32> to vector<16x1xf32>
    %cst_12 = arith.constant 7.812500e-03 : f32
    %13 = vector.broadcast %cst_12 : f32 to vector<16x1xf32>
    %14 = arith.mulf %12, %13 : vector<16x1xf32>
    %15 = arith.mulf %8, %8 : vector<16x128xf32>
    %cst_13 = arith.constant dense<0.000000e+00> : vector<16xf32>
    %16 = vector.multi_reduction <add>, %15, %cst_13 [1] : vector<16x128xf32> to vector<16xf32>
    %17 = vector.shape_cast %16 : vector<16xf32> to vector<16x1xf32>
    %cst_14 = arith.constant 7.812500e-03 : f32
    %18 = vector.broadcast %cst_14 : f32 to vector<16x1xf32>
    %19 = arith.mulf %17, %18 : vector<16x1xf32>
    %20 = arith.mulf %14, %14 : vector<16x1xf32>
    %21 = arith.subf %19, %20 : vector<16x1xf32>
    %cst_15 = arith.constant 0.000000e+00 : f32
    %22 = vector.broadcast %cst_15 : f32 to vector<16x1xf32>
    %23 = arith.maximumf %21, %22 : vector<16x1xf32>
    %24 = vector.broadcast %14 : vector<16x1xf32> to vector<16x128xf32>
    %25 = arith.subf %8, %24 : vector<16x128xf32>
    %cst_16 = arith.constant 9.99999996E-13 : f32
    %26 = vector.broadcast %cst_16 : f32 to vector<16x1xf32>
    %27 = arith.addf %23, %26 : vector<16x1xf32>
    %28 = math.rsqrt %27 : vector<16x1xf32>
    %29 = vector.broadcast %28 : vector<16x1xf32> to vector<16x128xf32>
    %30 = arith.mulf %25, %29 : vector<16x128xf32>
    %31 = vector.broadcast %9 : vector<1x128xf32> to vector<16x128xf32>
    %32 = arith.mulf %30, %31 : vector<16x128xf32>
    %33 = vector.broadcast %10 : vector<1x128xf32> to vector<16x128xf32>
    %34 = arith.addf %32, %33 : vector<16x128xf32>
    %35 = arith.truncf %34 : vector<16x128xf32> to vector<16x128xbf16>
    %c0_17 = arith.constant 0 : index
    %c0_18 = arith.constant 0 : index
    %36 = vector.load %arg9[%c0_17, %c0_18] : memref<16x128xbf16, #tpu.memory_space<vmem>>, vector<16x128xbf16>
    tpu.vector_store %arg9[%c0_17, %c0_18], %35 {strides = array<i32>} : memref<16x128xbf16, #tpu.memory_space<vmem>>, vector<16x128xbf16>,
    return
  }
  func.func @transform_0(%arg0: i32, %arg1: i32, %arg2: i32) -> (i32, i32) {
    %c0_i32 = arith.constant 0 : i32
    return %arg0, %arg2 : i32, i32
  }
  func.func @transform_1(%arg0: i32, %arg1: i32, %arg2: i32) -> (i32, i32) {
    %c0_i32 = arith.constant 0 : i32
    return %arg2, %arg1 : i32, i32
  }
  func.func @transform_2(%arg0: i32, %arg1: i32, %arg2: i32) -> (i32, i32) {
    %c0_i32 = arith.constant 0 : i32
    %c0_i32_0 = arith.constant 0 : i32
    return %c0_i32, %arg1 : i32, i32
  }
  func.func @transform_3(%arg0: i32, %arg1: i32, %arg2: i32) -> (i32, i32) {
    %c0_i32 = arith.constant 0 : i32
    %c0_i32_0 = arith.constant 0 : i32
    return %arg0, %c0_i32 : i32, i32
  }
  func.func @transform_4(%arg0: i32, %arg1: i32, %arg2: i32) -> (i32, i32) {
    %c0_i32 = arith.constant 0 : i32
    %c0_i32_0 = arith.constant 0 : i32
    %c0_i32_1 = arith.constant 0 : i32
    return %c0_i32, %c0_i32_0 : i32, i32
  }
  func.func @transform_5(%arg0: i32, %arg1: i32, %arg2: i32) -> (i32, i32) {
    %c0_i32 = arith.constant 0 : i32
    %c0_i32_0 = arith.constant 0 : i32
    %c0_i32_1 = arith.constant 0 : i32
    return %c0_i32, %c0_i32_0 : i32, i32
  }
  func.func @transform_6(%arg0: i32, %arg1: i32, %arg2: i32) -> (i32, i32) {
    %c0_i32 = arith.constant 0 : i32
    return %arg0, %arg1 : i32, i32
  }
}

module attributes {stable_mosaic.version = 11 : i64} {
  func.func @_attn_kernel(%arg0: i32, %arg1: i32, %arg2: memref<1x8x128xbf16, #tpu.memory_space<vmem>>, %arg3: memref<1x8x128xbf16, #tpu.memory_space<vmem>>, %arg4: memref<1x8x128xbf16, #tpu.memory_space<vmem>>, %arg5: memref<1x1x8xf32, #tpu.memory_space<vmem>>, %arg6: memref<1x8x128xbf16, #tpu.memory_space<vmem>>) attributes {dimension_semantics = [#tpu.dimension_semantics<parallel>, #tpu.dimension_semantics<parallel>], iteration_bounds = array<i64: 2, 1>, scalar_prefetch = 0 : i64, scratch_operands = 0 : i64, tpu.core_type = #tpu.core_type<tc>, window_params = [{transform_indices = @transform_0, window_bounds = array<i64: 1, 8, 128>}, {transform_indices = @transform_1, window_bounds = array<i64: 1, 8, 128>}, {transform_indices = @transform_2, window_bounds = array<i64: 1, 8, 128>}, {transform_indices = @transform_3, window_bounds = array<i64: 1, 1, 8>}, {transform_indices = @transform_4, window_bounds = array<i64: 1, 8, 128>}]} {
    %c0 = arith.constant 0 : index
    %c0_0 = arith.constant 0 : index
    %c0_1 = arith.constant 0 : index
    %0 = vector.load %arg2[%c0, %c0_0, %c0_1] : memref<1x8x128xbf16, #tpu.memory_space<vmem>>, vector<1x8x128xbf16>
    %1 = vector.shape_cast %0 : vector<1x8x128xbf16> to vector<8x128xbf16>
    %2 = vector.shape_cast %1 : vector<8x128xbf16> to vector<8x2x64xbf16>
    %c0_2 = arith.constant 0 : index
    %c0_3 = arith.constant 0 : index
    %c0_4 = arith.constant 0 : index
    %3 = vector.load %arg3[%c0_2, %c0_3, %c0_4] : memref<1x8x128xbf16, #tpu.memory_space<vmem>>, vector<1x8x128xbf16>
    %4 = vector.shape_cast %3 : vector<1x8x128xbf16> to vector<8x128xbf16>
    %5 = vector.shape_cast %4 : vector<8x128xbf16> to vector<8x2x64xbf16>
    %c0_5 = arith.constant 0 : index
    %c0_6 = arith.constant 0 : index
    %c0_7 = arith.constant 0 : index
    %6 = vector.load %arg4[%c0_5, %c0_6, %c0_7] : memref<1x8x128xbf16, #tpu.memory_space<vmem>>, vector<1x8x128xbf16>
    %7 = vector.shape_cast %6 : vector<1x8x128xbf16> to vector<8x128xbf16>
    %8 = vector.shape_cast %7 : vector<8x128xbf16> to vector<8x2x64xbf16>
    %c0_8 = arith.constant 0 : index
    %c0_9 = arith.constant 0 : index
    %c0_10 = arith.constant 0 : index
    %9 = vector.load %arg5[%c0_8, %c0_9, %c0_10] : memref<1x1x8xf32, #tpu.memory_space<vmem>>, vector<1x1x8xf32>
    %10 = vector.shape_cast %9 : vector<1x1x8xf32> to vector<1x8xf32>
    %cst = arith.constant dense<0.000000e+00> : vector<2x8x8xf32>
    %11 = tpu.matmul %2, %5, %cst {dimension_numbers = #tpu.dot_dimension_numbers<[2], [2], [0], [0], [0, 1, 0, 0, 1, 0], [1], [1]>} : vector<8x2x64xbf16>, vector<8x2x64xbf16>, vector<2x8x8xf32> -> vector<2x8x8xf32>
    %cst_11 = arith.constant 1.250000e-01 : f32
    %12 = vector.broadcast %cst_11 : f32 to vector<2x8x8xf32>
    %13 = arith.mulf %11, %12 : vector<2x8x8xf32>
    %14 = vector.shape_cast %10 : vector<1x8xf32> to vector<1x1x8xf32>
    %15 = vector.broadcast %14 : vector<1x1x8xf32> to vector<2x8x8xf32>
    %16 = arith.addf %13, %15 : vector<2x8x8xf32>
    %cst_12 = arith.constant dense<0xFF800000> : vector<2x8xf32>
    %17 = vector.multi_reduction <maximumf>, %16, %cst_12 [2] : vector<2x8x8xf32> to vector<2x8xf32>
    %18 = vector.shape_cast %17 : vector<2x8xf32> to vector<2x8x1xf32>
    %19 = vector.broadcast %18 : vector<2x8x1xf32> to vector<2x8x8xf32>
    %20 = arith.subf %16, %19 : vector<2x8x8xf32>
    %21 = math.exp %20 : vector<2x8x8xf32>
    %cst_13 = arith.constant dense<0.000000e+00> : vector<2x8xf32>
    %22 = vector.multi_reduction <add>, %21, %cst_13 [2] : vector<2x8x8xf32> to vector<2x8xf32>
    %23 = vector.shape_cast %22 : vector<2x8xf32> to vector<2x8x1xf32>
    %24 = tpu.reciprocal %23 {approx = true} : vector<2x8x1xf32> -> vector<2x8x1xf32>
    %25 = vector.broadcast %24 : vector<2x8x1xf32> to vector<2x8x8xf32>
    %26 = arith.mulf %21, %25 : vector<2x8x8xf32>
    %27 = arith.truncf %26 : vector<2x8x8xf32> to vector<2x8x8xbf16>
    %cst_14 = arith.constant dense<0.000000e+00> : vector<2x8x64xf32>
    %28 = tpu.matmul %27, %8, %cst_14 {dimension_numbers = #tpu.dot_dimension_numbers<[2], [0], [1], [2], [0, 0, 0, 1, 1, 2], [0], [1]>} : vector<2x8x8xbf16>, vector<8x2x64xbf16>, vector<2x8x64xf32> -> vector<2x8x64xf32>
    %29 = tpu.transpose %28, [1, 0, 2] : vector<2x8x64xf32> -> vector<8x2x64xf32>
    %30 = vector.shape_cast %29 : vector<8x2x64xf32> to vector<8x128xf32>
    %31 = arith.truncf %30 : vector<8x128xf32> to vector<8x128xbf16>
    %c0_15 = arith.constant 0 : index
    %c0_16 = arith.constant 0 : index
    %c0_17 = arith.constant 0 : index
    %32 = vector.load %arg6[%c0_15, %c0_16, %c0_17] : memref<1x8x128xbf16, #tpu.memory_space<vmem>>, vector<1x8x128xbf16>
    %33 = vector.shape_cast %32 : vector<1x8x128xbf16> to vector<8x128xbf16>
    %34 = vector.shape_cast %31 : vector<8x128xbf16> to vector<1x8x128xbf16>
    tpu.vector_store %arg6[%c0_15, %c0_16, %c0_17], %34 {strides = array<i32>} : memref<1x8x128xbf16, #tpu.memory_space<vmem>>, vector<1x8x128xbf16>,
    return
  }
  func.func @transform_0(%arg0: i32, %arg1: i32) -> (i32, i32, i32) {
    %c0_i32 = arith.constant 0 : i32
    %c0_i32_0 = arith.constant 0 : i32
    return %arg0, %arg1, %c0_i32 : i32, i32, i32
  }
  func.func @transform_1(%arg0: i32, %arg1: i32) -> (i32, i32, i32) {
    %c0_i32 = arith.constant 0 : i32
    %c1_i32 = arith.constant 1 : i32
    %c0_i32_0 = arith.constant 0 : i32
    return %arg0, %c0_i32, %c1_i32 : i32, i32, i32
  }
  func.func @transform_2(%arg0: i32, %arg1: i32) -> (i32, i32, i32) {
    %c0_i32 = arith.constant 0 : i32
    %c2_i32 = arith.constant 2 : i32
    %c0_i32_0 = arith.constant 0 : i32
    return %arg0, %c0_i32, %c2_i32 : i32, i32, i32
  }
  func.func @transform_3(%arg0: i32, %arg1: i32) -> (i32, i32, i32) {
    %c0_i32 = arith.constant 0 : i32
    %c0_i32_0 = arith.constant 0 : i32
    %c0_i32_1 = arith.constant 0 : i32
    return %arg0, %c0_i32, %c0_i32_0 : i32, i32, i32
  }
  func.func @transform_4(%arg0: i32, %arg1: i32) -> (i32, i32, i32) {
    %c0_i32 = arith.constant 0 : i32
    %c0_i32_0 = arith.constant 0 : i32
    return %arg0, %arg1, %c0_i32 : i32, i32, i32
  }
}

module attributes {stable_mosaic.version = 11 : i64} {
  func.func @_matmul_bias_single_k_kernel(%arg0: i32, %arg1: i32, %arg2: i32, %arg3: memref<16x128xbf16, #tpu.memory_space<vmem>>, %arg4: memref<128x384xbf16, #tpu.memory_space<vmem>>, %arg5: memref<1x384xf32, #tpu.memory_space<vmem>>, %arg6: memref<16x384xbf16, #tpu.memory_space<vmem>>) attributes {dimension_semantics = [#tpu.dimension_semantics<parallel>, #tpu.dimension_semantics<parallel>, #tpu.dimension_semantics<arbitrary>], iteration_bounds = array<i64: 1, 1, 1>, scalar_prefetch = 0 : i64, scratch_operands = 0 : i64, tpu.core_type = #tpu.core_type<tc>, window_params = [{transform_indices = @transform_0, window_bounds = array<i64: 16, 128>}, {transform_indices = @transform_1, window_bounds = array<i64: 128, 384>}, {transform_indices = @transform_2, window_bounds = array<i64: 1, 384>}, {transform_indices = @transform_3, window_bounds = array<i64: 16, 384>}]} {
    %c0 = arith.constant 0 : index
    %c0_0 = arith.constant 0 : index
    %0 = vector.load %arg3[%c0, %c0_0] : memref<16x128xbf16, #tpu.memory_space<vmem>>, vector<16x128xbf16>
    %c0_1 = arith.constant 0 : index
    %c0_2 = arith.constant 0 : index
    %1 = vector.load %arg4[%c0_1, %c0_2] : memref<128x384xbf16, #tpu.memory_space<vmem>>, vector<128x384xbf16>
    %cst = arith.constant dense<0.000000e+00> : vector<16x384xf32>
    %2 = tpu.matmul %0, %1, %cst {dimension_numbers = #tpu.dot_dimension_numbers<[1], [0], [0], [1], [0, 0, 1, 1], [], []>} : vector<16x128xbf16>, vector<128x384xbf16>, vector<16x384xf32> -> vector<16x384xf32>
    %c0_3 = arith.constant 0 : index
    %c0_4 = arith.constant 0 : index
    %3 = vector.load %arg5[%c0_3, %c0_4] : memref<1x384xf32, #tpu.memory_space<vmem>>, vector<1x384xf32>
    %4 = vector.broadcast %3 : vector<1x384xf32> to vector<16x384xf32>
    %5 = arith.addf %2, %4 : vector<16x384xf32>
    %6 = arith.truncf %5 : vector<16x384xf32> to vector<16x384xbf16>
    %c0_5 = arith.constant 0 : index
    %c0_6 = arith.constant 0 : index
    %7 = vector.load %arg6[%c0_5, %c0_6] : memref<16x384xbf16, #tpu.memory_space<vmem>>, vector<16x384xbf16>
    tpu.vector_store %arg6[%c0_5, %c0_6], %6 {strides = array<i32>} : memref<16x384xbf16, #tpu.memory_space<vmem>>, vector<16x384xbf16>,
    return
  }
  func.func @transform_0(%arg0: i32, %arg1: i32, %arg2: i32) -> (i32, i32) {
    %c0_i32 = arith.constant 0 : i32
    return %arg0, %arg2 : i32, i32
  }
  func.func @transform_1(%arg0: i32, %arg1: i32, %arg2: i32) -> (i32, i32) {
    %c0_i32 = arith.constant 0 : i32
    return %arg2, %arg1 : i32, i32
  }
  func.func @transform_2(%arg0: i32, %arg1: i32, %arg2: i32) -> (i32, i32) {
    %c0_i32 = arith.constant 0 : i32
    %c0_i32_0 = arith.constant 0 : i32
    return %c0_i32, %arg1 : i32, i32
  }
  func.func @transform_3(%arg0: i32, %arg1: i32, %arg2: i32) -> (i32, i32) {
    %c0_i32 = arith.constant 0 : i32
    return %arg0, %arg1 : i32, i32
  }
}

module attributes {stable_mosaic.version = 11 : i64} {
  func.func @_head_kernel(%arg0: i32, %arg1: memref<2x128xbf16, #tpu.memory_space<vmem>>, %arg2: memref<128x128xbf16, #tpu.memory_space<vmem>>, %arg3: memref<1x128xf32, #tpu.memory_space<vmem>>, %arg4: memref<128x128xbf16, #tpu.memory_space<vmem>>, %arg5: memref<1x128xf32, #tpu.memory_space<vmem>>, %arg6: memref<2x128xf32, #tpu.memory_space<vmem>>) attributes {dimension_semantics = [#tpu.dimension_semantics<arbitrary>], iteration_bounds = array<i64: 1>, scalar_prefetch = 0 : i64, scratch_operands = 0 : i64, tpu.core_type = #tpu.core_type<tc>, window_params = [{pipeline_mode = #tpu.pipeline_mode<synchronous>, transform_indices = @transform_0, window_bounds = array<i64: 2, 128>}, {pipeline_mode = #tpu.pipeline_mode<synchronous>, transform_indices = @transform_1, window_bounds = array<i64: 128, 128>}, {pipeline_mode = #tpu.pipeline_mode<synchronous>, transform_indices = @transform_2, window_bounds = array<i64: 1, 128>}, {pipeline_mode = #tpu.pipeline_mode<synchronous>, transform_indices = @transform_3, window_bounds = array<i64: 128, 128>}, {pipeline_mode = #tpu.pipeline_mode<synchronous>, transform_indices = @transform_4, window_bounds = array<i64: 1, 128>}, {pipeline_mode = #tpu.pipeline_mode<synchronous>, transform_indices = @transform_5, window_bounds = array<i64: 2, 128>}]} {
    %c0 = arith.constant 0 : index
    %c0_0 = arith.constant 0 : index
    %0 = vector.load %arg1[%c0, %c0_0] : memref<2x128xbf16, #tpu.memory_space<vmem>>, vector<2x128xbf16>
    %c0_1 = arith.constant 0 : index
    %c0_2 = arith.constant 0 : index
    %1 = vector.load %arg2[%c0_1, %c0_2] : memref<128x128xbf16, #tpu.memory_space<vmem>>, vector<128x128xbf16>
    %cst = arith.constant dense<0.000000e+00> : vector<2x128xf32>
    %2 = tpu.matmul %0, %1, %cst {dimension_numbers = #tpu.dot_dimension_numbers<[1], [0], [0], [1], [0, 0, 1, 1], [], []>} : vector<2x128xbf16>, vector<128x128xbf16>, vector<2x128xf32> -> vector<2x128xf32>
    %c0_3 = arith.constant 0 : index
    %c0_4 = arith.constant 0 : index
    %3 = vector.load %arg3[%c0_3, %c0_4] : memref<1x128xf32, #tpu.memory_space<vmem>>, vector<1x128xf32>
    %4 = vector.broadcast %3 : vector<1x128xf32> to vector<2x128xf32>
    %5 = arith.addf %2, %4 : vector<2x128xf32>
    %6 = math.tanh %5 : vector<2x128xf32>
    %7 = arith.truncf %6 : vector<2x128xf32> to vector<2x128xbf16>
    %c0_5 = arith.constant 0 : index
    %c0_6 = arith.constant 0 : index
    %8 = vector.load %arg4[%c0_5, %c0_6] : memref<128x128xbf16, #tpu.memory_space<vmem>>, vector<128x128xbf16>
    %cst_7 = arith.constant dense<0.000000e+00> : vector<2x128xf32>
    %9 = tpu.matmul %7, %8, %cst_7 {dimension_numbers = #tpu.dot_dimension_numbers<[1], [0], [0], [1], [0, 0, 1, 1], [], []>} : vector<2x128xbf16>, vector<128x128xbf16>, vector<2x128xf32> -> vector<2x128xf32>
    %c0_8 = arith.constant 0 : index
    %c0_9 = arith.constant 0 : index
    %10 = vector.load %arg5[%c0_8, %c0_9] : memref<1x128xf32, #tpu.memory_space<vmem>>, vector<1x128xf32>
    %11 = vector.broadcast %10 : vector<1x128xf32> to vector<2x128xf32>
    %12 = arith.addf %9, %11 : vector<2x128xf32>
    %c0_10 = arith.constant 0 : index
    %c0_11 = arith.constant 0 : index
    %13 = vector.load %arg6[%c0_10, %c0_11] : memref<2x128xf32, #tpu.memory_space<vmem>>, vector<2x128xf32>
    tpu.vector_store %arg6[%c0_10, %c0_11], %12 {strides = array<i32>} : memref<2x128xf32, #tpu.memory_space<vmem>>, vector<2x128xf32>,
    return
  }
  func.func @transform_0(%arg0: i32) -> (i32, i32) {
    %c0_i32 = arith.constant 0 : i32
    %c0_i32_0 = arith.constant 0 : i32
    %c0_i32_1 = arith.constant 0 : i32
    return %c0_i32, %c0_i32_0 : i32, i32
  }
  func.func @transform_1(%arg0: i32) -> (i32, i32) {
    %c0_i32 = arith.constant 0 : i32
    %c0_i32_0 = arith.constant 0 : i32
    %c0_i32_1 = arith.constant 0 : i32
    return %c0_i32, %c0_i32_0 : i32, i32
  }
  func.func @transform_2(%arg0: i32) -> (i32, i32) {
    %c0_i32 = arith.constant 0 : i32
    %c0_i32_0 = arith.constant 0 : i32
    %c0_i32_1 = arith.constant 0 : i32
    return %c0_i32, %c0_i32_0 : i32, i32
  }
  func.func @transform_3(%arg0: i32) -> (i32, i32) {
    %c0_i32 = arith.constant 0 : i32
    %c0_i32_0 = arith.constant 0 : i32
    %c0_i32_1 = arith.constant 0 : i32
    return %c0_i32, %c0_i32_0 : i32, i32
  }
  func.func @transform_4(%arg0: i32) -> (i32, i32) {
    %c0_i32 = arith.constant 0 : i32
    %c0_i32_0 = arith.constant 0 : i32
    %c0_i32_1 = arith.constant 0 : i32
    return %c0_i32, %c0_i32_0 : i32, i32
  }
  func.func @transform_5(%arg0: i32) -> (i32, i32) {
    %c0_i32 = arith.constant 0 : i32
    %c0_i32_0 = arith.constant 0 : i32
    %c0_i32_1 = arith.constant 0 : i32
    return %c0_i32, %c0_i32_0 : i32, i32
  }
}

module attributes {stable_mosaic.version = 11 : i64} {
  func.func @_ffn_kernel(%arg0: i32, %arg1: memref<16x128xbf16, #tpu.memory_space<vmem>>, %arg2: memref<128x512xbf16, #tpu.memory_space<vmem>>, %arg3: memref<1x512xf32, #tpu.memory_space<vmem>>, %arg4: memref<512x128xbf16, #tpu.memory_space<vmem>>, %arg5: memref<1x128xf32, #tpu.memory_space<vmem>>, %arg6: memref<16x128xbf16, #tpu.memory_space<vmem>>, %arg7: memref<1x128xf32, #tpu.memory_space<vmem>>, %arg8: memref<1x128xf32, #tpu.memory_space<vmem>>, %arg9: memref<16x128xbf16, #tpu.memory_space<vmem>>) attributes {dimension_semantics = [#tpu.dimension_semantics<parallel>], iteration_bounds = array<i64: 1>, scalar_prefetch = 0 : i64, scratch_operands = 0 : i64, tpu.core_type = #tpu.core_type<tc>, window_params = [{transform_indices = @transform_0, window_bounds = array<i64: 16, 128>}, {pipeline_mode = #tpu.pipeline_mode<synchronous>, transform_indices = @transform_1, window_bounds = array<i64: 128, 512>}, {pipeline_mode = #tpu.pipeline_mode<synchronous>, transform_indices = @transform_2, window_bounds = array<i64: 1, 512>}, {pipeline_mode = #tpu.pipeline_mode<synchronous>, transform_indices = @transform_3, window_bounds = array<i64: 512, 128>}, {pipeline_mode = #tpu.pipeline_mode<synchronous>, transform_indices = @transform_4, window_bounds = array<i64: 1, 128>}, {transform_indices = @transform_5, window_bounds = array<i64: 16, 128>}, {pipeline_mode = #tpu.pipeline_mode<synchronous>, transform_indices = @transform_6, window_bounds = array<i64: 1, 128>}, {pipeline_mode = #tpu.pipeline_mode<synchronous>, transform_indices = @transform_7, window_bounds = array<i64: 1, 128>}, {transform_indices = @transform_8, window_bounds = array<i64: 16, 128>}]} {
    %c0 = arith.constant 0 : index
    %c0_0 = arith.constant 0 : index
    %0 = vector.load %arg1[%c0, %c0_0] : memref<16x128xbf16, #tpu.memory_space<vmem>>, vector<16x128xbf16>
    %cst = arith.constant 0.000000e+00 : f32
    %1 = vector.broadcast %cst : f32 to vector<16x128xf32>
    %c0_1 = arith.constant 0 : index
    %c0_2 = arith.constant 0 : index
    %2 = vector.load %arg2[%c0_1, %c0_2] : memref<128x512xbf16, #tpu.memory_space<vmem>>, vector<128x512xbf16>
    %cst_3 = arith.constant dense<0.000000e+00> : vector<16x512xf32>
    %3 = tpu.matmul %0, %2, %cst_3 {dimension_numbers = #tpu.dot_dimension_numbers<[1], [0], [0], [1], [0, 0, 1, 1], [], []>} : vector<16x128xbf16>, vector<128x512xbf16>, vector<16x512xf32> -> vector<16x512xf32>
    %c0_4 = arith.constant 0 : index
    %c0_5 = arith.constant 0 : index
    %4 = vector.load %arg3[%c0_4, %c0_5] : memref<1x512xf32, #tpu.memory_space<vmem>>, vector<1x512xf32>
    %5 = vector.broadcast %4 : vector<1x512xf32> to vector<16x512xf32>
    %6 = arith.addf %3, %5 : vector<16x512xf32>
    %7 = arith.mulf %6, %6 : vector<16x512xf32>
    %8 = arith.mulf %6, %7 : vector<16x512xf32>
    %cst_6 = arith.constant 4.471500e-02 : f32
    %9 = vector.broadcast %cst_6 : f32 to vector<16x512xf32>
    %10 = arith.mulf %9, %8 : vector<16x512xf32>
    %11 = arith.addf %6, %10 : vector<16x512xf32>
    %cst_7 = arith.constant 0.797884583 : f32
    %12 = vector.broadcast %cst_7 : f32 to vector<16x512xf32>
    %13 = arith.mulf %12, %11 : vector<16x512xf32>
    %14 = math.tanh %13 : vector<16x512xf32>
    %cst_8 = arith.constant 1.000000e+00 : f32
    %15 = vector.broadcast %cst_8 : f32 to vector<16x512xf32>
    %16 = arith.addf %15, %14 : vector<16x512xf32>
    %cst_9 = arith.constant 5.000000e-01 : f32
    %17 = vector.broadcast %cst_9 : f32 to vector<16x512xf32>
    %18 = arith.mulf %17, %16 : vector<16x512xf32>
    %19 = arith.mulf %6, %18 : vector<16x512xf32>
    %20 = arith.truncf %19 : vector<16x512xf32> to vector<16x512xbf16>
    %c0_10 = arith.constant 0 : index
    %c0_11 = arith.constant 0 : index
    %21 = vector.load %arg4[%c0_10, %c0_11] : memref<512x128xbf16, #tpu.memory_space<vmem>>, vector<512x128xbf16>
    %cst_12 = arith.constant dense<0.000000e+00> : vector<16x128xf32>
    %22 = tpu.matmul %20, %21, %cst_12 {dimension_numbers = #tpu.dot_dimension_numbers<[1], [0], [0], [1], [0, 0, 1, 1], [], []>} : vector<16x512xbf16>, vector<512x128xbf16>, vector<16x128xf32> -> vector<16x128xf32>
    %23 = arith.addf %1, %22 : vector<16x128xf32>
    %c0_13 = arith.constant 0 : index
    %c0_14 = arith.constant 0 : index
    %24 = vector.load %arg5[%c0_13, %c0_14] : memref<1x128xf32, #tpu.memory_space<vmem>>, vector<1x128xf32>
    %25 = vector.broadcast %24 : vector<1x128xf32> to vector<16x128xf32>
    %26 = arith.addf %23, %25 : vector<16x128xf32>
    %c0_15 = arith.constant 0 : index
    %c0_16 = arith.constant 0 : index
    %27 = vector.load %arg6[%c0_15, %c0_16] : memref<16x128xbf16, #tpu.memory_space<vmem>>, vector<16x128xbf16>
    %28 = arith.extf %27 : vector<16x128xbf16> to vector<16x128xf32>
    %29 = arith.addf %26, %28 : vector<16x128xf32>
    %c0_17 = arith.constant 0 : index
    %c0_18 = arith.constant 0 : index
    %30 = vector.load %arg7[%c0_17, %c0_18] : memref<1x128xf32, #tpu.memory_space<vmem>>, vector<1x128xf32>
    %c0_19 = arith.constant 0 : index
    %c0_20 = arith.constant 0 : index
    %31 = vector.load %arg8[%c0_19, %c0_20] : memref<1x128xf32, #tpu.memory_space<vmem>>, vector<1x128xf32>
    %cst_21 = arith.constant dense<0.000000e+00> : vector<16xf32>
    %32 = vector.multi_reduction <add>, %29, %cst_21 [1] : vector<16x128xf32> to vector<16xf32>
    %33 = vector.shape_cast %32 : vector<16xf32> to vector<16x1xf32>
    %cst_22 = arith.constant 7.812500e-03 : f32
    %34 = vector.broadcast %cst_22 : f32 to vector<16x1xf32>
    %35 = arith.mulf %33, %34 : vector<16x1xf32>
    %36 = arith.mulf %29, %29 : vector<16x128xf32>
    %cst_23 = arith.constant dense<0.000000e+00> : vector<16xf32>
    %37 = vector.multi_reduction <add>, %36, %cst_23 [1] : vector<16x128xf32> to vector<16xf32>
    %38 = vector.shape_cast %37 : vector<16xf32> to vector<16x1xf32>
    %cst_24 = arith.constant 7.812500e-03 : f32
    %39 = vector.broadcast %cst_24 : f32 to vector<16x1xf32>
    %40 = arith.mulf %38, %39 : vector<16x1xf32>
    %41 = arith.mulf %35, %35 : vector<16x1xf32>
    %42 = arith.subf %40, %41 : vector<16x1xf32>
    %cst_25 = arith.constant 0.000000e+00 : f32
    %43 = vector.broadcast %cst_25 : f32 to vector<16x1xf32>
    %44 = arith.maximumf %42, %43 : vector<16x1xf32>
    %45 = vector.broadcast %35 : vector<16x1xf32> to vector<16x128xf32>
    %46 = arith.subf %29, %45 : vector<16x128xf32>
    %cst_26 = arith.constant 9.99999996E-13 : f32
    %47 = vector.broadcast %cst_26 : f32 to vector<16x1xf32>
    %48 = arith.addf %44, %47 : vector<16x1xf32>
    %49 = math.rsqrt %48 : vector<16x1xf32>
    %50 = vector.broadcast %49 : vector<16x1xf32> to vector<16x128xf32>
    %51 = arith.mulf %46, %50 : vector<16x128xf32>
    %52 = vector.broadcast %30 : vector<1x128xf32> to vector<16x128xf32>
    %53 = arith.mulf %51, %52 : vector<16x128xf32>
    %54 = vector.broadcast %31 : vector<1x128xf32> to vector<16x128xf32>
    %55 = arith.addf %53, %54 : vector<16x128xf32>
    %56 = arith.truncf %55 : vector<16x128xf32> to vector<16x128xbf16>
    %c0_27 = arith.constant 0 : index
    %c0_28 = arith.constant 0 : index
    %57 = vector.load %arg9[%c0_27, %c0_28] : memref<16x128xbf16, #tpu.memory_space<vmem>>, vector<16x128xbf16>
    tpu.vector_store %arg9[%c0_27, %c0_28], %56 {strides = array<i32>} : memref<16x128xbf16, #tpu.memory_space<vmem>>, vector<16x128xbf16>,
    return
  }
  func.func @transform_0(%arg0: i32) -> (i32, i32) {
    %c0_i32 = arith.constant 0 : i32
    %c0_i32_0 = arith.constant 0 : i32
    return %arg0, %c0_i32 : i32, i32
  }
  func.func @transform_1(%arg0: i32) -> (i32, i32) {
    %c0_i32 = arith.constant 0 : i32
    %c0_i32_0 = arith.constant 0 : i32
    %c0_i32_1 = arith.constant 0 : i32
    return %c0_i32, %c0_i32_0 : i32, i32
  }
  func.func @transform_2(%arg0: i32) -> (i32, i32) {
    %c0_i32 = arith.constant 0 : i32
    %c0_i32_0 = arith.constant 0 : i32
    %c0_i32_1 = arith.constant 0 : i32
    return %c0_i32, %c0_i32_0 : i32, i32
  }
  func.func @transform_3(%arg0: i32) -> (i32, i32) {
    %c0_i32 = arith.constant 0 : i32
    %c0_i32_0 = arith.constant 0 : i32
    %c0_i32_1 = arith.constant 0 : i32
    return %c0_i32, %c0_i32_0 : i32, i32
  }
  func.func @transform_4(%arg0: i32) -> (i32, i32) {
    %c0_i32 = arith.constant 0 : i32
    %c0_i32_0 = arith.constant 0 : i32
    %c0_i32_1 = arith.constant 0 : i32
    return %c0_i32, %c0_i32_0 : i32, i32
  }
  func.func @transform_5(%arg0: i32) -> (i32, i32) {
    %c0_i32 = arith.constant 0 : i32
    %c0_i32_0 = arith.constant 0 : i32
    return %arg0, %c0_i32 : i32, i32
  }
  func.func @transform_6(%arg0: i32) -> (i32, i32) {
    %c0_i32 = arith.constant 0 : i32
    %c0_i32_0 = arith.constant 0 : i32
    %c0_i32_1 = arith.constant 0 : i32
    return %c0_i32, %c0_i32_0 : i32, i32
  }
  func.func @transform_7(%arg0: i32) -> (i32, i32) {
    %c0_i32 = arith.constant 0 : i32
    %c0_i32_0 = arith.constant 0 : i32
    %c0_i32_1 = arith.constant 0 : i32
    return %c0_i32, %c0_i32_0 : i32, i32
  }
  func.func @transform_8(%arg0: i32) -> (i32, i32) {
    %c0_i32 = arith.constant 0 : i32
    %c0_i32_0 = arith.constant 0 : i32
    return %arg0, %c0_i32 : i32, i32
  }
}

</mosaic_0001>

<bundles_post_ra>
// kernel: bert_class_forward.10
= control target key start
LH: loop header
LB: loop body
LE: loop exit
PB: predicated region body
PF: predicated region fallthrough
CT: control target
= control target key end

     0   :  { %s399_s18 = smov 0   ;;  %s432_s0 = inlined_call_operand.vmem [shape: f32[2,8,128], index: 0, kind: input, shape index: {}]   ;;  %s433_s1 = inlined_call_operand.vmem [shape: f32[2,8,128], index: 1, kind: input, shape index: {}]   ;;  %s434_s2 = inlined_call_operand.vmem [shape: f32[8,128], index: 2, kind: input, shape index: {}]   ;;  %s435_s3 = inlined_call_operand.vmem [shape: f32[1,128], index: 3, kind: input, shape index: {}]   ;;  %s436_s4 = inlined_call_operand.vmem [shape: f32[1,128], index: 4, kind: input, shape index: {}]   ;;  %s437_s5 = inlined_call_operand.vmem [shape: bf16[2,8,128], index: 5, kind: output, shape index: {}]  }
   0x1 LB: > { %s339_s19 = sadd.s32 4294967295, %s367_s18   ;;  %p343_p0 = scmp.ge.s32.totalorder %s367_s18, 1  ;;  %s367_s18 = sphi %s399_s18, %s15_s18  }
   0x2   : > { %p195_p1 = scmp.lt.s32.totalorder %s367_s18, 3 }
   0x4   : > { %p196_p2 = pnand %p343_p0, %p195_p1 }
   0x5   : > { %p225_p3 = scmp.lt.s32.totalorder (!%p196_p2), %s339_s19, 1 }
   0x6   : > { %199 = sbr.rel (%p196_p2) target bundleno = 193 (0xc1), region = 40 }
   0xb   : > { %s439_s19 = smov (!%p225_p3, %s339_s19), 1  ;;  %v240_v2 = vld [vmem:[%s434_s2] sm:$0xff] }
   0xc   : > { %s344_s20 = sshll.u32 %s439_s19, 3  ;;  %v347_v16 = vld [vmem:[%s435_s3] ss:$0 sm:$0xff]  ;;  %s346_s8 = sshll.u32 %s439_s19, 2 }
   0xd   : > { %s228_s23 = scalar_lea.vmem %s432_s0, %s344_s20  ;;  %s232_s26 = scalar_lea.vmem %s433_s1, %s344_s20  ;;  %v348_v18 = vld [vmem:[%s436_s4] ss:$0 sm:$0xff] }
   0xe   : > { %v237_v0 = vld [vmem:[%s228_s23] sm:$0xff]  ;;  %s236_s11 = scalar_lea.vmem %s437_s5, %s346_s8 }
   0xf   : > { %v238_v1 = vld [vmem:[%s232_s26] sm:$0xff] }
  0x10   : > { %v239_v3 = vadd.f32 %v238_v1, %v237_v0 }
  0x12   : > { %v241_v4 = vadd.f32 %v240_v2, %v239_v3 }
  0x14   : > { %244 = vadd.xlane.f32.xlu0 %v241_v4  ;;  %v247_v5 = vmul.f32 %v241_v4, %v241_v4 }
  0x18   : > { %248 = vadd.xlane.f32.xlu0 %v247_v5 }
  0x9d   : > { %v245_v6 = vpop.xlane.xlu0 %244 }
  0x9e   : > { %v246_v7 = vmul.f32 0.0078125, %v245_v6 }
  0xa0   : > { %v251_v9 = vmul.f32 %v246_v7, %v246_v7  ;;  %v254_v14 = vsub.f32 %v241_v4, %v246_v7 }
  0xa1   : > { %v249_v8 = vpop.xlane.xlu0 %248 }
  0xa2   : > { %v250_v10 = vmul.f32 0.0078125, %v249_v8 }
  0xa4   : > { %v252_v11 = vsub.f32 %v250_v10, %v251_v9 }
  0xa6   : > { %v253_v12 = vmax.f32 %v252_v11, 0.0 }
  0xa8   : > { %v255_v13 = vadd.f32 1e-12, %v253_v12 }
  0xaa   : > { %359 = vrsqrt.f32 %v255_v13 }
  0xb7   : > { %v360_v15 = vpop.eup %359 }
  0xb8   : > { %v257_v17 = vmul.f32 %v360_v15, %v254_v14 }
  0xba   : > { %v264_v19 = vmul.f32 %v347_v16, %v257_v17 }
  0xbc   : > { %v271_v20 = vadd.f32 %v348_v18, %v264_v19 }
  0xbe   : > { %v272_v21 = vpack.c.bf16 %v271_v20, %v271_v20 }
  0xc0   : > { %273 = vst [vmem:[%s236_s11] sm:$0xf] %v272_v21 }
  0xc1 PF: > { %s15_s18 = sadd.s32 1, %s367_s18  }
  0xc2   : > { %p12_p4 = scmp.ge.s32.totalorder %s15_s18, 4  }
  0xc4   :  { %14 = sbr.rel (!%p12_p4) target bundleno = 1 (0x1), region = 73 }

// kernel: bert_class_forward.13
= control target key start
LH: loop header
LB: loop body
LE: loop exit
PB: predicated region body
PF: predicated region fallthrough
CT: control target
= control target key end

     0   :  { %v279_v0 = vmov 0.0   ;;  %vm280_vm0 = vmmov 0   ;;  %s358_s1 = inlined_call_operand.vmem [shape: bf16[128,128], index: 1, kind: input, shape index: {}]   ;;  %s359_s0 = inlined_call_operand.vmem [shape: bf16[16,128], index: 0, kind: input, shape index: {}]   ;;  %s360_s3 = inlined_call_operand.vmem [shape: bf16[16,128], index: 3, kind: input, shape index: {}]   ;;  %s361_s2 = inlined_call_operand.vmem [shape: f32[1,128], index: 2, kind: input, shape index: {}]   ;;  %s362_s4 = inlined_call_operand.vmem [shape: f32[1,128], index: 4, kind: input, shape index: {}]   ;;  %s363_s5 = inlined_call_operand.vmem [shape: f32[1,128], index: 5, kind: input, shape index: {}]   ;;  %s364_s6 = inlined_call_operand.vmem [shape: bf16[16,128], index: 6, kind: output, shape index: {}]  }
   0x1   :  { %244 = vmatprep.subr.bf16.mxu0 %v279_v0  ;;  %v266_v1 = vld [vmem:[%s358_s1 + $0x38] sm:$0xff]   ;;  %260 = vmatprep.mubr.msk.bf16.mxu0 %vm280_vm0, %v279_v0  ;;  %v267_v2 = vld [vmem:[%s358_s1 + $0x30] sm:$0xff]   ;;  %v268_v3 = vld [vmem:[%s358_s1 + $0x28] sm:$0xff]  }
   0x2   :  { %245 = vmatpush3.bf16.msra.mxu0 %v266_v1  ;;  %v269_v4 = vld [vmem:[%s358_s1 + $0x20] sm:$0xff]   ;;  %v270_v5 = vld [vmem:[%s358_s1 + $0x18] sm:$0xff]   ;;  %v271_v6 = vld [vmem:[%s358_s1 + $0x10] sm:$0xff]  }
   0x3   :  { %246 = vmatprep.subr.bf16.mxu0 %v279_v0  ;;  %v272_v7 = vld [vmem:[%s358_s1 + $0x8] sm:$0xff]   ;;  %v273_v8 = vld [vmem:[%s358_s1] sm:$0xff]  }
   0x4   :  { %v274_v9 = vld [vmem:[%s359_s0] sm:$0xff]  }
   0x5   :  { %v227_v10 = vld [vmem:[%s360_s3] sm:$0xff]  }
   0x6   :  { %247 = vmatpush3.bf16.msra.mxu0 %v267_v2  ;;  %v210_v11 = vld [vmem:[%s361_s2] ss:$0 sm:$0xff]  ;;  %v228_v12 = vunpack.c.l.bf16 %v227_v10  ;;  %v229_v17 = vunpack.c.h.bf16 %v227_v10 }
   0x7   :  { %248 = vmatprep.subr.bf16.mxu0 %v279_v0  ;;  %v220_v43 = vld [vmem:[%s362_s4] ss:$0 sm:$0xff] }
   0x8   :  { %v221_v48 = vld [vmem:[%s363_s5] ss:$0 sm:$0xff] }
   0xa   :  { %249 = vmatpush3.bf16.msra.mxu0 %v268_v3 }
   0xb   :  { %250 = vmatprep.subr.bf16.mxu0 %v279_v0 }
   0xe   :  { %251 = vmatpush3.bf16.msra.mxu0 %v269_v4 }
   0xf   :  { %252 = vmatprep.subr.bf16.mxu0 %v279_v0 }
  0x12   :  { %253 = vmatpush3.bf16.msra.mxu0 %v270_v5 }
  0x13   :  { %254 = vmatprep.subr.bf16.mxu0 %v279_v0 }
  0x16   :  { %255 = vmatpush3.bf16.msra.mxu0 %v271_v6 }
  0x17   :  { %256 = vmatprep.subr.bf16.mxu0 %v279_v0 }
  0x1a   :  { %257 = vmatpush3.bf16.msra.mxu0 %v272_v7 }
  0x1b   :  { %258 = vmatprep.subr.bf16.mxu0 %v279_v0 }
  0x1e   :  { %259 = vmatpush3.bf16.msra.mxu0 %v273_v8 }
  0x21   :  { %261 = vmatmul.mubr.bf16.vlgmr.msra.gmra.mxu0 %v274_v9 }
  0xe1   :  { %v137_v13 = vpop.f32.mrf.mxu0 }
  0xe2   :  { %v138_v14 = vadd.f32 %v210_v11, %v137_v13 }
  0xe3   :  { %v262_v15 = vpop.f32.mrf.mxu0 }
  0xe4   :  { %v148_v16 = vadd.f32 %v228_v12, %v138_v14 }
  0xe5   :  { %v140_v18 = vpop.f32.mrf.mxu0 }
  0xe6   :  { %v141_v19 = vadd.f32 %v210_v11, %v140_v18  ;;  %152 = vadd.xlane.f32.xlu0 %v148_v16  ;;  %v158_v20 = vmul.f32 %v148_v16, %v148_v16 }
  0xe7   :  { %v263_v21 = vpop.f32.mrf.mxu0 }
  0xe8   :  { %v149_v22 = vadd.f32 %v229_v17, %v141_v19  ;;  %160 = vadd.xlane.f32.xlu1 %v158_v20 }
  0xea   :  { %154 = vadd.xlane.f32.xlu0 %v149_v22  ;;  %v159_v23 = vmul.f32 %v149_v22, %v149_v22 }
  0xec   :  { %162 = vadd.xlane.f32.xlu1 %v159_v23 }
 0x16f   :  { %v153_v24 = vpop.xlane.xlu0 %152 }
 0x170   :  { %v156_v25 = vmul.f32 0.0078125, %v153_v24 }
 0x171   :  { %v161_v26 = vpop.xlane.xlu1 %160 }
 0x172   :  { %v166_v27 = vmul.f32 %v156_v25, %v156_v25  ;;  %v164_v28 = vmul.f32 0.0078125, %v161_v26  ;;  %v172_v40 = vsub.f32 %v148_v16, %v156_v25 }
 0x173   :  { %v155_v29 = vpop.xlane.xlu0 %154 }
 0x174   :  { %v168_v30 = vsub.f32 %v164_v28, %v166_v27  ;;  %v157_v31 = vmul.f32 0.0078125, %v155_v29 }
 0x175   :  { %v163_v32 = vpop.xlane.xlu1 %162 }
 0x176   :  { %v170_v33 = vmax.f32 %v168_v30, 0.0  ;;  %v167_v34 = vmul.f32 %v157_v31, %v157_v31  ;;  %v165_v35 = vmul.f32 0.0078125, %v163_v32  ;;  %v173_v44 = vsub.f32 %v149_v22, %v157_v31 }
 0x178   :  { %v174_v36 = vadd.f32 1e-12, %v170_v33  ;;  %v169_v37 = vsub.f32 %v165_v35, %v167_v34 }
 0x17a   :  { %275 = vrsqrt.f32 %v174_v36  ;;  %v171_v38 = vmax.f32 %v169_v37, 0.0 }
 0x17c   :  { %v175_v39 = vadd.f32 1e-12, %v171_v38 }
 0x17e   :  { %277 = vrsqrt.f32 %v175_v39 }
 0x187   :  { %v276_v41 = vpop.eup %275 }
 0x188   :  { %v178_v42 = vmul.f32 %v276_v41, %v172_v40 }
 0x18a   :  { %v186_v46 = vmul.f32 %v220_v43, %v178_v42 }
 0x18b   :  { %v278_v45 = vpop.eup %277 }
 0x18c   :  { %v179_v47 = vmul.f32 %v278_v45, %v173_v44  ;;  %v194_v50 = vadd.f32 %v221_v48, %v186_v46 }
 0x18e   :  { %v187_v49 = vmul.f32 %v220_v43, %v179_v47 }
 0x190   :  { %v195_v51 = vadd.f32 %v221_v48, %v187_v49 }
 0x192   :  { %v233_v52 = vpack.c.bf16 %v195_v51, %v194_v50 }
 0x194   :  { %234 = vst [vmem:[%s364_s6] sm:$0xff] %v233_v52  }

// kernel: bert_class_forward.11
= control target key start
LH: loop header
LB: loop body
LE: loop exit
PB: predicated region body
PF: predicated region fallthrough
CT: control target
= control target key end

     0   :  { %v410_v0 = vmov 0.0   ;;  %vm411_vm0 = vmmov 0   ;;  %v412_v3 = vmov 0   ;;  %v51_v27 = vlaneseq  ;;  %s523_s1 = inlined_call_operand.vmem [shape: bf16[128,384], index: 1, kind: input, shape index: {}]   ;;  %s524_s0 = inlined_call_operand.vmem [shape: bf16[16,128], index: 0, kind: input, shape index: {}]   ;;  %s525_s2 = inlined_call_operand.vmem [shape: f32[1,384], index: 2, kind: input, shape index: {}]   ;;  %s526_s3 = inlined_call_operand.vmem [shape: bf16[16,384], index: 3, kind: output, shape index: {}]  }
   0x1   :  { %354 = vmatprep.subr.bf16.mxu1 %v410_v0  ;;  %v377_v1 = vld [vmem:[%s523_s1 + $0xac] ss:$12 sps:$4 sm:$0xff]   ;;  %370 = vmatprep.mubr.msk.bf16.mxu1 %vm411_vm0, %v410_v0  ;;  %v379_v2 = vld [vmem:[%s523_s1 + $0xb0] ss:$12 sps:$4 sm:$0xff]   ;;  %v380_v4 = vld [vmem:[%s523_s1 + $0xa8] ss:$12 sps:$4 sm:$0xff]  }
   0x2   :  { %232 = vmatprep.mubr.bf16.mxu0 %v412_v3  ;;  %200 = vmatprep.subr.bf16.mxu0 %v377_v1  ;;  %v381_v5 = vld [vmem:[%s523_s1 + $0x94] ss:$12 sps:$4 sm:$0xff]   ;;  %v383_v6 = vld [vmem:[%s523_s1 + $0x98] ss:$12 sps:$4 sm:$0xff]   ;;  %v384_v7 = vld [vmem:[%s523_s1 + $0x90] ss:$12 sps:$4 sm:$0xff]  }
   0x3   :  { %355 = vmatpush3.bf16.msra.mxu1 %v379_v2  ;;  %201 = vmatpush1.bf16.msra.mxu0 %v380_v4  ;;  %v385_v8 = vld [vmem:[%s523_s1 + $0x7c] ss:$12 sps:$4 sm:$0xff]   ;;  %v387_v9 = vld [vmem:[%s523_s1 + $0x80] ss:$12 sps:$4 sm:$0xff]   ;;  %v388_v10 = vld [vmem:[%s523_s1 + $0x78] ss:$12 sps:$4 sm:$0xff]  }
   0x4   :  { %356 = vmatprep.subr.bf16.mxu1 %v410_v0  ;;  %202 = vmatprep.subr.bf16.mxu0 %v381_v5  ;;  %v389_v11 = vld [vmem:[%s523_s1 + $0x64] ss:$12 sps:$4 sm:$0xff]   ;;  %v391_v12 = vld [vmem:[%s523_s1 + $0x68] ss:$12 sps:$4 sm:$0xff]   ;;  %v392_v13 = vld [vmem:[%s523_s1 + $0x60] ss:$12 sps:$4 sm:$0xff]  }
   0x5   :  { %v393_v14 = vld [vmem:[%s523_s1 + $0x4c] ss:$12 sps:$4 sm:$0xff]   ;;  %v395_v15 = vld [vmem:[%s523_s1 + $0x50] ss:$12 sps:$4 sm:$0xff]   ;;  %v396_v16 = vld [vmem:[%s523_s1 + $0x48] ss:$12 sps:$4 sm:$0xff]  }
   0x6   :  { %v397_v17 = vld [vmem:[%s523_s1 + $0x34] ss:$12 sps:$4 sm:$0xff]   ;;  %v399_v18 = vld [vmem:[%s523_s1 + $0x38] ss:$12 sps:$4 sm:$0xff]   ;;  %v400_v19 = vld [vmem:[%s523_s1 + $0x30] ss:$12 sps:$4 sm:$0xff]  }
   0x7   :  { %357 = vmatpush3.bf16.msra.mxu1 %v383_v6  ;;  %203 = vmatpush1.bf16.msra.mxu0 %v384_v7  ;;  %v401_v20 = vld [vmem:[%s523_s1 + $0x1c] ss:$12 sps:$4 sm:$0xff]   ;;  %v403_v21 = vld [vmem:[%s523_s1 + $0x20] ss:$12 sps:$4 sm:$0xff]   ;;  %v404_v22 = vld [vmem:[%s523_s1 + $0x18] ss:$12 sps:$4 sm:$0xff]  }
   0x8   :  { %358 = vmatprep.subr.bf16.mxu1 %v410_v0  ;;  %204 = vmatprep.subr.bf16.mxu0 %v385_v8  ;;  %v405_v23 = vld [vmem:[%s523_s1 + $0x4] ss:$12 sps:$4 sm:$0xff]   ;;  %v407_v24 = vld [vmem:[%s523_s1 + $0x8] ss:$12 sps:$4 sm:$0xff]   ;;  %v408_v25 = vld [vmem:[%s523_s1] ss:$12 sps:$4 sm:$0xff]  }
   0x9   :  { %v409_v26 = vld [vmem:[%s524_s0] sm:$0xff]   ;;  %v52_v28 = vshrl.u32 %v51_v27, 7 }
   0xa   :  { %v49_v30 = vld [vmem:[%s525_s2] sm:$0x7] }
   0xb   :  { %359 = vmatpush3.bf16.msra.mxu1 %v387_v9  ;;  %205 = vmatpush1.bf16.msra.mxu0 %v388_v10  ;;  %v61_v29 = vsub.s32 2, %v52_v28  ;;  %v53_v31 = vsub.s32 0, %v52_v28  ;;  %v57_v32 = vsub.s32 1, %v52_v28 }
   0xc   :  { %360 = vmatprep.subr.bf16.mxu1 %v410_v0  ;;  %206 = vmatprep.subr.bf16.mxu0 %v389_v11 }
   0xd   :  { %v62_v33 = vrot.slane %v49_v30, %v61_v29  ;;  %v54_v35 = vrot.slane %v49_v30, %v53_v31  ;;  %v58_v36 = vrot.slane %v49_v30, %v57_v32 }
   0xf   :  { %361 = vmatpush3.bf16.msra.mxu1 %v391_v12  ;;  %207 = vmatpush1.bf16.msra.mxu0 %v392_v13 }
  0x10   :  { %362 = vmatprep.subr.bf16.mxu1 %v410_v0  ;;  %208 = vmatprep.subr.bf16.mxu0 %v393_v14 }
  0x13   :  { %363 = vmatpush3.bf16.msra.mxu1 %v395_v15  ;;  %209 = vmatpush1.bf16.msra.mxu0 %v396_v16 }
  0x14   :  { %364 = vmatprep.subr.bf16.mxu1 %v410_v0  ;;  %210 = vmatprep.subr.bf16.mxu0 %v397_v17 }
  0x17   :  { %365 = vmatpush3.bf16.msra.mxu1 %v399_v18  ;;  %211 = vmatpush1.bf16.msra.mxu0 %v400_v19 }
  0x18   :  { %366 = vmatprep.subr.bf16.mxu1 %v410_v0  ;;  %212 = vmatprep.subr.bf16.mxu0 %v401_v20 }
  0x1b   :  { %367 = vmatpush3.bf16.msra.mxu1 %v403_v21  ;;  %213 = vmatpush1.bf16.msra.mxu0 %v404_v22 }
  0x1c   :  { %368 = vmatprep.subr.bf16.mxu1 %v410_v0  ;;  %214 = vmatprep.subr.bf16.mxu0 %v405_v23 }
  0x1f   :  { %369 = vmatpush3.bf16.msra.mxu1 %v407_v24  ;;  %215 = vmatpush1.bf16.msra.mxu0 %v408_v25 }
  0x22   :  { %371 = vmatmul.mubr.bf16.vlgmr.msra.gmra.mxu1 %v409_v26  ;;  %233 = vmatmul.mubr.bf16.vlgmr.msra.gmra.mxu0 %v409_v26 }
  0xe2   :  { %v277_v34 = vpop.f32.mrf.mxu1  ;;  %v234_v38 = vpop.f32.mrf.mxu0 }
  0xe3   :  { %v278_v37 = vadd.f32 %v277_v34, %v62_v33  ;;  %v235_v42 = vadd.f32 %v234_v38, %v54_v35 }
  0xe4   :  { %v372_v39 = vpop.f32.mrf.mxu1  ;;  %v236_v41 = vpop.f32.mrf.mxu0 }
  0xe5   :  { %v342_v40 = vpack.c.bf16 %v278_v37, %v278_v37  ;;  %v237_v43 = vadd.f32 %v236_v41, %v58_v36 }
  0xe6   :  { %v280_v44 = vpop.f32.mrf.mxu1  ;;  %v238_v46 = vpop.f32.mrf.mxu0 }
  0xe7   :  { %305 = vst [vmem:[%s526_s3 + $0x8] sm:$0xf] %v342_v40  ;;  %v281_v45 = vadd.f32 %v280_v44, %v62_v33  ;;  %v341_v47 = vpack.c.bf16 %v237_v43, %v235_v42  ;;  %v239_v51 = vadd.f32 %v238_v46, %v54_v35 }
  0xe8   :  { %v373_v48 = vpop.f32.mrf.mxu1  ;;  %v240_v50 = vpop.f32.mrf.mxu0 }
  0xe9   :  { %v344_v49 = vpack.c.bf16 %v281_v45, %v281_v45  ;;  %304 = vst [vmem:[%s526_s3] sm:$0xff] %v341_v47  ;;  %v241_v52 = vadd.f32 %v240_v50, %v58_v36 }
  0xeb   :  { %307 = vst [vmem:[%s526_s3 + $0x14] sm:$0xf] %v344_v49  ;;  %v343_v53 = vpack.c.bf16 %v241_v52, %v239_v51 }
  0xed   :  { %306 = vst [vmem:[%s526_s3 + $0xc] sm:$0xff] %v343_v53 }

// kernel: bert_class_forward.19
= control target key start
LH: loop header
LB: loop body
LE: loop exit
PB: predicated region body
PF: predicated region fallthrough
CT: control target
= control target key end

     0   :  { %v381_v1 = vmov 0.0   ;;  %vm382_vm0 = vmmov 0   ;;  %s474_s0 = inlined_call_operand.vmem [shape: bf16[2,128], index: 0, kind: input, shape index: {}]   ;;  %s475_s1 = inlined_call_operand.vmem [shape: bf16[128,128], index: 1, kind: input, shape index: {}]   ;;  %s476_s2 = inlined_call_operand.vmem [shape: f32[1,128], index: 2, kind: input, shape index: {}]   ;;  %s477_s3 = inlined_call_operand.vmem [shape: bf16[128,128], index: 3, kind: input, shape index: {}]   ;;  %s478_s4 = inlined_call_operand.vmem [shape: f32[1,128], index: 4, kind: input, shape index: {}]   ;;  %s479_s5 = inlined_call_operand.hbm [shape: f32[2,128], index: 5, kind: output, shape index: {}]  }
   0x1   :  { %v341_v0 = vld [vmem:[%s475_s1 + $0x38] sm:$0xff]   ;;  %298 = vmatprep.subr.bf16.mxu0 %v381_v1  ;;  %318 = vmatprep.subr.bf16.mxu1 %v381_v1  ;;  %v342_v2 = vld [vmem:[%s475_s1 + $0x30] sm:$0xff]   ;;  %v343_v3 = vld [vmem:[%s475_s1 + $0x28] sm:$0xff]  }
   0x2   :  { %299 = vmatpush3.bf16.msra.mxu0 %v341_v0  ;;  %314 = vmatprep.mubr.msk.bf16.mxu0 %vm382_vm0, %v381_v1  ;;  %v349_v4 = vld [vmem:[%s477_s3 + $0x38] sm:$0xff]   ;;  %v344_v5 = vld [vmem:[%s475_s1 + $0x20] sm:$0xff]   ;;  %v350_v6 = vld [vmem:[%s477_s3 + $0x30] sm:$0xff]  }
   0x3   :  { %300 = vmatprep.subr.bf16.mxu0 %v381_v1  ;;  %334 = vmatprep.mubr.msk.bf16.mxu1 %vm382_vm0, %v381_v1  ;;  %v345_v7 = vld [vmem:[%s475_s1 + $0x18] sm:$0xff]   ;;  %v351_v8 = vld [vmem:[%s477_s3 + $0x28] sm:$0xff]  }
   0x4   :  { %319 = vmatpush3.bf16.msra.mxu1 %v349_v4 }
   0x5   :  { %320 = vmatprep.subr.bf16.mxu1 %v381_v1 }
   0x6   :  { %301 = vmatpush3.bf16.msra.mxu0 %v342_v2 }
   0x7   :  { %302 = vmatprep.subr.bf16.mxu0 %v381_v1 }
   0x8   :  { %321 = vmatpush3.bf16.msra.mxu1 %v350_v6 }
   0xa   :  { %303 = vmatpush3.bf16.msra.mxu0 %v343_v3 }
   0xb   :  { %304 = vmatprep.subr.bf16.mxu0 %v381_v1 }
   0xe   :  { %305 = vmatpush3.bf16.msra.mxu0 %v344_v5 }
   0xf   :  { %306 = vmatprep.subr.bf16.mxu0 %v381_v1 }
  0x10   :  { %10 = vsyncpa [#allocation3], 0  ;;  %322 = vmatprep.subr.bf16.mxu1 %v381_v1  ;;  %v346_v9 = vld [vmem:[%s475_s1 + $0x10] sm:$0xff]   ;;  %v347_v10 = vld [vmem:[%s475_s1 + $0x8] sm:$0xff]  }
  0x11   :  { %323 = vmatpush3.bf16.msra.mxu1 %v351_v8  ;;  %v348_v11 = vld [vmem:[%s475_s1] sm:$0xff]   ;;  %v353_v14 = vld [vmem:[%s477_s3 + $0x18] sm:$0xff]   ;;  %v354_v15 = vld [vmem:[%s477_s3 + $0x10] sm:$0xff]  }
  0x12   :  { %307 = vmatpush3.bf16.msra.mxu0 %v345_v7  ;;  %324 = vmatprep.subr.bf16.mxu1 %v381_v1  ;;  %v22_v12 = vld [vmem:[%s474_s0] sm:$0x1]  ;;  %v355_v16 = vld [vmem:[%s477_s3 + $0x8] sm:$0xff]  }
  0x13   :  { %308 = vmatprep.subr.bf16.mxu0 %v381_v1  ;;  %v352_v13 = vld [vmem:[%s477_s3 + $0x20] sm:$0xff]  }
  0x14   :  { %v356_v17 = vld [vmem:[%s477_s3] sm:$0xff]   ;;  %s383_s3 = smov [#allocation2]  }
  0x15   :  { %325 = vmatpush3.bf16.msra.mxu1 %v352_v13  ;;  %v262_v18 = vld [vmem:[%s476_s2] ss:$0 sm:$0xff]  ;;  %s254_s29 = sshll.u32 %s383_s3, 4  ;;  %s255_s29 = int_to_ptr.vmem [resolvable:$true] %s254_s29 }
  0x16   :  { %309 = vmatpush3.bf16.msra.mxu0 %v346_v9  ;;  %326 = vmatprep.subr.bf16.mxu1 %v381_v1  ;;  %v271_v26 = vld [vmem:[%s478_s4] ss:$0 sm:$0xff]  ;;  %s359_s2 = scalar_lea.vmem %s255_s29, 32  ;;  %p364_p1 = scmp.lt.s32.totalorder %s255_s29, %s255_s29 }
  0x17   :  { %310 = vmatprep.subr.bf16.mxu0 %v381_v1  ;;  %p360_p0 = scmp.ne.s32.totalorder %s255_s29, %s359_s2  ;;  %p365_p2 = scmp.lt.s32.totalorder %s359_s2, %s359_s2 }
  0x19   :  { %327 = vmatpush3.bf16.msra.mxu1 %v353_v14  ;;  %p366_p3 = por %p365_p2, %p364_p1 }
  0x1a   :  { %311 = vmatpush3.bf16.msra.mxu0 %v347_v10  ;;  %328 = vmatprep.subr.bf16.mxu1 %v381_v1 }
  0x1b   :  { %312 = vmatprep.subr.bf16.mxu0 %v381_v1  ;;  %p367_p4 = pnand %p366_p3, %p360_p0 }
  0x1d   :  { %329 = vmatpush3.bf16.msra.mxu1 %v354_v15 }
  0x1e   :  { %313 = vmatpush3.bf16.msra.mxu0 %v348_v11  ;;  %330 = vmatprep.subr.bf16.mxu1 %v381_v1 }
  0x21   :  { %315 = vmatmul.mubr.bf16.vlgmr.msra.gmra.mxu0 %v22_v12  ;;  %331 = vmatpush3.bf16.msra.mxu1 %v355_v16 }
  0x22   :  { %332 = vmatprep.subr.bf16.mxu1 %v381_v1 }
  0x25   :  { %333 = vmatpush3.bf16.msra.mxu1 %v356_v17 }
  0xe1   :  { %v128_v19 = vpop.f32.mrf.mxu0 }
  0xe2   :  { %v129_v20 = vadd.f32 %v262_v18, %v128_v19 }
  0xe3   :  { %v316_v21 = vpop.f32.mrf.mxu0 }
  0xe4   :  { %357 = vtanh.f32 %v129_v20 }
  0xe5   :  { %v131_v22 = vpop.f32.mrf.mxu0 }
  0xe7   :  { %v317_v23 = vpop.f32.mrf.mxu0 }
  0xf1   :  { %v358_v24 = vpop.eup %357 }
  0xf2   :  { %v135_v25 = vpack.c.bf16 %v358_v24, %v358_v24 }
  0xf4   :  { %335 = vmatmul.mubr.bf16.vlgmr.msra.gmra.mxu1 %v135_v25 }
 0x1b4   :  { %v241_v27 = vpop.f32.mrf.mxu1 }
 0x1b5   :  { %v242_v28 = vadd.f32 %v271_v26, %v241_v27 }
 0x1b6   :  { %v336_v29 = vpop.f32.mrf.mxu1 }
 0x1b7   :  { %247 = vst [vmem:[#allocation2] sm:$0x3] %v242_v28 }
 0x1b8   :  { %v244_v30 = vpop.f32.mrf.mxu1 }
 0x1b9   :  { %370 = shalt.err (!%p367_p4)
}
 0x1ba   :  { %257 = dma.vmem_to_hbm [thread:$0]  %s255_s29, 32, %s479_s5, [#allocation3]   ;;  %v337_v31 = vpop.f32.mrf.mxu1 }
 0x1bb   :  { %379 = dma.done.wait [#allocation3], 32  }
 0x1bc   :  { %380 = vsyncadd [#allocation3], 4294967264 }
 0x1bd   :  { %261 = vsyncpa [#allocation3], 1 }

// kernel: bert_class_forward.12
= control target key start
LH: loop header
LB: loop body
LE: loop exit
PB: predicated region body
PF: predicated region fallthrough
CT: control target
= control target key end

     0   :  { %s3459_s15 = smov 0   ;;  %s3461_s16 = smov 0   ;;  %s4093_s0 = inlined_call_operand.vmem [shape: bf16[2,8,384], index: 0, kind: input, shape index: {}, may-alias: {0,1,2}]   ;;  %s4094_s1 = inlined_call_operand.vmem [shape: bf16[2,8,384], index: 1, kind: input, shape index: {}, may-alias: {0,1,2}]   ;;  %s4095_s2 = inlined_call_operand.vmem [shape: bf16[2,8,384], index: 2, kind: input, shape index: {}, may-alias: {0,1,2}]   ;;  %s4096_s3 = inlined_call_operand.vmem [shape: f32[2,1,8], index: 3, kind: input, shape index: {}]   ;;  %s4097_s4 = inlined_call_operand.vmem [shape: bf16[2,8,128], index: 4, kind: output, shape index: {}]  }
   0x1   :  { %s3463_s17 = smov 0  }
   0x2 LB: > { %s26_s18 = sadd.s32 1, %s3422_s16  ;;  %p3295_p0 = scmp.ge.s32.totalorder %s3426_s17, 1  ;;  %s3426_s17 = sphi %s3463_s17, %s14_s17   ;;  %s3422_s16 = sphi %s3461_s16, %s4099_s16   ;;  %s3418_s15 = sphi %s3459_s15, %s4098_s15  }
   0x3   : > { %p28_p1 = scmp.ge.s32.totalorder %s26_s18, 2  ;;  %p212_p2 = scmp.lt.s32.totalorder %s3426_s17, 3 }
   0x5   : > { %s4101_s18 = smov (%p28_p1, %s26_s18), 0  ;;  %p213_p3 = pnand %p3295_p0, %p212_p2 }
   0x6   : > { %p259_p4 = scmp.lt.s32.totalorder (!%p213_p3), %s3418_s15, 1  ;;  %s3428_s26 = smov (!%p213_p3), 64  }
   0x7   : > { %216 = sbr.rel (%p213_p3) target bundleno = 1420 (0x58c), region = 36 }
   0xc   : > { %s4103_s15 = smov (!%p259_p4, %s3418_s15), 1  ;;  %v3429_v2 = vmov 1983009808   ;;  %v305_v4 = vlaneseq  ;;  %v3430_v5 = vmov 1934713408   ;;  %v3431_v21 = vmov 0  }
   0xd   : > { %s3480_s19 = smul.u32 12, %s4103_s15  ;;  %v303_v3 = vunpack.c.l.s4 %v3429_v2  ;;  %v311_v6 = vunpack.c.l.s4 %v3430_v5  ;;  %vm3433_vm0 = vmmov 0   ;;  %vm2774_vm1 = vcmask 523264   ;;  %s282_s29 = scalar_lea.vmem %s4096_s3, %s4103_s15 }
   0xe   : > { %v306_v8 = vshrl.u32 %v305_v4, 7  ;;  %vm2871_vm2 = vcmask 64512   ;;  %vm2953_vm3 = vcmask 1043456   ;;  %s3299_s7 = sshll.u32 %s4103_s15, 2 }
   0xf   : > { %s3229_s22 = scalar_lea.vmem %s4094_s1, %s3480_s19  ;;  %s267_s25 = scalar_lea.vmem %s4093_s0, %s3480_s19  ;;  %v304_v7 = vunpack.c.0.s8 %v303_v3  ;;  %v312_v9 = vunpack.c.0.s8 %v311_v6 }
  0x10   : > { %v3300_v0 = vld [vmem:[%s3229_s22 + $0x4] sm:$0xf]  ;;  %v3490_v1 = vld [vmem:[%s267_s25] sm:$0xf]  ;;  %s3233_s6 = scalar_lea.vmem %s4095_s2, %s3480_s19  ;;  %s289_s10 = scalar_lea.vmem %s4097_s4, %s3299_s7 }
  0x11   : > { %353 = vrot.lane.b32.xlu0 %v3300_v0, %s3428_s26  ;;  %293 = vrot.lane.b32.xlu1 %v3490_v1, %s3428_s26  ;;  %v358_v10 = vshrl.u32 %v3300_v0, 16  ;;  %v3495_v11 = vsub.s32 %v304_v7, %v306_v8  ;;  %v3497_v15 = vsub.s32 %v312_v9, %v306_v8 }
  0x83   : > { %v354_v12 = vpop.permute.xlu0 %353  ;;  %v3511_v30 = vpop.permute.xlu1 %293 }
  0x84   : > { %v357_v13 = vpack.i.b16 %v354_v12, %v3300_v0  ;;  %v359_v14 = vshrl.u32 %v354_v12, 16 }
  0x86   : > { %v368_v16 = vrot.slane %v357_v13, %v3495_v11  ;;  %v360_v17 = vpack.i.b16 %v359_v14, %v358_v10 }
  0x88   : > { %v376_v18 = vrot.slane %v368_v16, %v3497_v15  ;;  %v393_v19 = vrot.slane %v360_v17, %v3495_v11  ;;  %v369_v25 = vcombine.high %v368_v16, %v3431_v21 }
  0x8a   : > { %526 = vxpose.xlu0.c.b16.start.end [1/1] (short) (narrow) %v376_v18, 64  ;;  %v401_v20 = vrot.slane %v393_v19, %v3497_v15  ;;  %v394_v22 = vcombine.high %v393_v19, %v3431_v21  ;;  %v384_v24 = vcombine.high %v376_v18, %v3431_v21  ;;  %v383_v27 = vrot.slane %v369_v25, %v3497_v15 }
  0x8c   : > { %542 = vxpose.xlu1.c.b16.start.end [1/1] (short) (narrow) %v401_v20, 64  ;;  %v408_v23 = vrot.slane %v394_v22, %v3497_v15  ;;  %v409_v28 = vcombine.high %v401_v20, %v3431_v21  ;;  %v385_v29 = vcombine.high %v383_v27, %v3431_v21 }
  0x8e   : > { %v410_v26 = vcombine.high %v408_v23, %v3431_v21 }
  0x97   : > { %606 = vxpose.xlu0.c.b16.start.end [1/1] (short) (narrow) %v408_v23, 64 }
  0x99   : > { %558 = vxpose.xlu1.c.b16.start.end [1/1] (short) (narrow) %v384_v24, 64 }
  0xa4   : > { %638 = vxpose.xlu0.c.b16.start.end [1/1] (short) (narrow) %v410_v26, 64 }
  0xa6   : > { %590 = vxpose.xlu1.c.b16.start.end [1/1] (short) (narrow) %v383_v27, 64 }
  0xb3   : > { %574 = vxpose.xlu1.c.b16.start.end [1/1] (short) (narrow) %v409_v28, 64 }
  0xc0   : > { %622 = vxpose.xlu1.c.b16.start.end [1/1] (short) (narrow) %v385_v29, 64 }
  0xec   : > { %v3513_v31 = vpop.trf.xlu0 }
  0xed   : > { %v658_v25 = vshrl.u32 %v3513_v31, 16 }
  0xee   : > { %v3515_v32 = vpop.trf.xlu1 }
  0xef   : > { %v659_v26 = vshrl.u32 %v3515_v32, 16 }
  0xf0   : > { %v3517_v33 = vpop.trf.xlu0 }
  0xf2   : > { %v3519_v34 = vpop.trf.xlu1 }
  0xf4   : > { %v536_v35 = vpop.trf.xlu0 }
  0xf5   : > { %v722_v36 = vshrl.u32 %v536_v35, 16 }
  0xf6   : > { %v552_v37 = vpop.trf.xlu1 }
  0xf7   : > { %v3521_v38 = vpack.i.b16 %v552_v37, %v536_v35  ;;  %v723_v39 = vshrl.u32 %v552_v37, 16  ;;  %v656_v37 = vpack.i.b16 %v3515_v32, %v3513_v31 }
  0xf8   : > { %v537_v40 = vpop.trf.xlu0 }
  0xf9   : > { %v3523_v41 = vpack.i.b16 %v723_v39, %v722_v36  ;;  %v754_v42 = vshrl.u32 %v537_v40, 16 }
  0xfa   : > { %v553_v43 = vpop.trf.xlu1 }
  0xfb   : > { %v3525_v44 = vpack.i.b16 %v553_v43, %v537_v40  ;;  %v755_v45 = vshrl.u32 %v553_v43, 16 }
  0xfc   : > { %v614_v49 = vpop.trf.xlu0 }
  0xfd   : > { %v3527_v46 = vpack.i.b16 %v755_v45, %v754_v42  ;;  %v675_v18 = vshrl.u32 %v614_v49, 16 }
  0xfe   : > { %v566_v47 = vpop.trf.xlu1 }
  0xff   : > { %v666_v42 = vshrl.u32 %v566_v47, 16 }
 0x100   : > { %v3533_v52 = vpop.trf.xlu0 }
 0x102   : > { %v3529_v48 = vpop.trf.xlu1 }
 0x104   : > { %v616_v54 = vpop.trf.xlu0 }
 0x105   : > { %v739_v56 = vshrl.u32 %v616_v54, 16 }
 0x106   : > { %v3531_v50 = vpop.trf.xlu1 }
 0x108   : > { %v617_v58 = vpop.trf.xlu0 }
 0x109   : > { %v771_v0 = vshrl.u32 %v617_v58, 16 }
 0x10a   : > { %v569_v51 = vpop.trf.xlu1 }
 0x10b   : > { %v762_v22 = vshrl.u32 %v569_v51, 16 }
 0x10c   : > { %v646_v17 = vpop.trf.xlu0 }
 0x10d   : > { %v683_v36 = vshrl.u32 %v646_v17, 16 }
 0x10e   : > { %v598_v53 = vpop.trf.xlu1 }
 0x10f   : > { %v674_v19 = vshrl.u32 %v598_v53, 16  ;;  %v672_v27 = vpack.i.b16 %v614_v49, %v598_v53  ;;  %v691_v49 = vshrl.u32 %v3519_v34, 16 }
 0x110   : > { %v3569_v28 = vpop.trf.xlu0 }
 0x111   : > { %v676_v39 = vpack.i.b16 %v675_v18, %v674_v19  ;;  %v783_v32 = vcombine.high %v656_v37, %v672_v27 }
 0x112   : > { %v3535_v55 = vpop.trf.xlu1 }
 0x114   : > { %v648_v31 = vpop.trf.xlu0 }
 0x116   : > { %v600_v57 = vpop.trf.xlu1 }
 0x117   : > { %v3537_v59 = vpack.i.b16 %v616_v54, %v600_v57  ;;  %v738_v60 = vshrl.u32 %v600_v57, 16  ;;  %v660_v54 = vpack.i.b16 %v659_v26, %v658_v25  ;;  %v782_v57 = vcombine.low %v656_v37, %v672_v27 }
 0x119   : > { %v3539_v61 = vpack.i.b16 %v739_v56, %v738_v60  ;;  %v1054_v62 = vcombine.low %v3521_v38, %v3537_v59  ;;  %v1055_v63 = vcombine.high %v3521_v38, %v3537_v59  ;;  %v690_v56 = vshrl.u32 %v3517_v33, 16 }
 0x11a   : > { %v601_v2 = vpop.trf.xlu1  ;;  %v790_v19 = vrot.slane %v782_v57, %v3495_v11  ;;  %v851_v25 = vcombine.high %v660_v54, %v676_v39 }
 0x11b   : > { %v1122_v3 = vcombine.low %v3523_v41, %v3539_v61  ;;  %v1123_v4 = vcombine.high %v3523_v41, %v3539_v61  ;;  %v3549_v5 = vpack.i.b16 %v617_v58, %v601_v2  ;;  %v770_v6 = vshrl.u32 %v601_v2, 16 }
 0x11c   : > { %v707_v2 = vshrl.u32 %v3533_v52, 16 }
 0x11d   : > { %v3551_v7 = vpack.i.b16 %v771_v0, %v770_v6  ;;  %v1190_v8 = vcombine.low %v3525_v44, %v3549_v5  ;;  %v1191_v9 = vcombine.high %v3525_v44, %v3549_v5  ;;  %v850_v0 = vcombine.low %v660_v54, %v676_v39 }
 0x11e   : > { %v582_v10 = vpop.trf.xlu1  ;;  %v747_v54 = vshrl.u32 %v648_v31, 16 }
 0x11f   : > { %v1258_v12 = vcombine.low %v3527_v46, %v3551_v7  ;;  %v1259_v13 = vcombine.high %v3527_v46, %v3551_v7  ;;  %v667_v29 = vshrl.u32 %v582_v10, 16  ;;  %v664_v43 = vpack.i.b16 %v582_v10, %v566_v47 }
 0x120   : > { %v3580_v47 = vpack.i.b16 %v3533_v52, %v3535_v55  ;;  %v706_v10 = vshrl.u32 %v3535_v55, 16  ;;  %v730_v52 = vshrl.u32 %v3531_v50, 16 }
 0x121   : > { %v668_v53 = vpack.i.b16 %v667_v29, %v666_v42  ;;  %v649_v42 = vpop.trf.xlu0 }
 0x122   : > { %v3561_v14 = vpop.trf.xlu1  ;;  %v3594_v37 = vpack.i.b16 %v707_v2, %v706_v10 }
 0x126   : > { %v3563_v16 = vpop.trf.xlu1 }
 0x127   : > { %v731_v10 = vshrl.u32 %v3563_v16, 16 }
 0x12a   : > { %v585_v20 = vpop.trf.xlu1 }
 0x12b   : > { %v3565_v23 = vpack.i.b16 %v585_v20, %v569_v51  ;;  %v763_v24 = vshrl.u32 %v585_v20, 16 }
 0x12d   : > { %v3571_v35 = vpack.i.b16 %v763_v24, %v762_v22  ;;  %v3587_v22 = vpack.i.b16 %v3519_v34, %v3517_v33  ;;  %v3589_v24 = vpack.i.b16 %v691_v49, %v690_v56  ;;  %v715_v33 = vshrl.u32 %v3569_v28, 16 }
 0x12e   : > { %v630_v40 = vpop.trf.xlu1  ;;  %v3600_v34 = vrot.slane %v783_v32, %v3495_v11  ;;  %v3607_v49 = vrot.slane %v851_v25, %v3495_v11  ;;  %v728_v32 = vpack.i.b16 %v3563_v16, %v3531_v50  ;;  %v3627_v50 = vpack.i.b16 %v3561_v14, %v3529_v48 }
 0x12f   : > { %v680_v45 = vpack.i.b16 %v646_v17, %v630_v40  ;;  %v682_v51 = vshrl.u32 %v630_v40, 16  ;;  %v918_v40 = vcombine.low %v3587_v22, %v3580_v47 }
 0x131   : > { %v684_v58 = vpack.i.b16 %v683_v36, %v682_v51  ;;  %v798_v60 = vcombine.low %v664_v43, %v680_v45  ;;  %v799_v18 = vcombine.high %v664_v43, %v680_v45  ;;  %v858_v36 = vrot.slane %v850_v0, %v3495_v11 }
 0x132   : > { %v631_v6 = vpop.trf.xlu1 }
 0x133   : > { %v866_v17 = vcombine.low %v668_v53, %v684_v58  ;;  %v806_v20 = vrot.slane %v798_v60, %v3495_v11  ;;  %v867_v27 = vcombine.high %v668_v53, %v684_v58  ;;  %v3604_v51 = vrot.slane %v799_v18, %v3495_v11 }
 0x134   : > { %v714_v53 = vshrl.u32 %v631_v6, 16  ;;  %v699_v18 = vshrl.u32 %v3561_v14, 16 }
 0x135   : > { %v874_v26 = vrot.slane %v866_v17, %v3495_v11  ;;  %v814_v55 = vcombine.low %v790_v19, %v806_v20  ;;  %v815_v45 = vcombine.high %v790_v19, %v806_v20  ;;  %v3611_v2 = vrot.slane %v867_v27, %v3495_v11 }
 0x136   : > { %v632_v29 = vpop.trf.xlu1  ;;  %v779_v17 = vshrl.u32 %v649_v42, 16  ;;  %v830_v25 = vcombine.low %v3600_v34, %v3604_v51  ;;  %v3630_v27 = vpack.i.b16 %v715_v33, %v714_v53  ;;  %v3645_v33 = vrot.slane %v918_v40, %v3495_v11 }
 0x137   : > { %v822_v39 = vrot.slane %v814_v55, %v3497_v15  ;;  %v882_v43 = vcombine.low %v858_v36, %v874_v26  ;;  %v744_v56 = vpack.i.b16 %v648_v31, %v632_v29  ;;  %v746_v57 = vshrl.u32 %v632_v29, 16 }
 0x138   : > { %v883_v0 = vcombine.high %v858_v36, %v874_v26  ;;  %v3617_v31 = vpack.i.b16 %v3569_v28, %v631_v6  ;;  %v829_v20 = vrot.slane %v815_v45, %v3497_v15  ;;  %v986_v26 = vcombine.low %v3589_v24, %v3594_v37 }
 0x139   : > { %1326 = vxpose.xlu0.c.b16.start.end [1/1] (short) (narrow) %v822_v39, 16  ;;  %v890_v60 = vrot.slane %v882_v43, %v3497_v15  ;;  %v748_v16 = vpack.i.b16 %v747_v54, %v746_v57  ;;  %v1070_v28 = vcombine.low %v728_v32, %v744_v56  ;;  %v698_v6 = vshrl.u32 %v3529_v48, 16 }
 0x13a   : > { %v633_v58 = vpop.trf.xlu1  ;;  %v897_v29 = vrot.slane %v883_v0, %v3497_v15  ;;  %v898_v55 = vcombine.low %v3607_v49, %v3611_v2  ;;  %v919_v36 = vcombine.high %v3587_v22, %v3580_v47  ;;  %v732_v43 = vpack.i.b16 %v731_v10, %v730_v52 }
 0x13b   : > { %v778_v19 = vshrl.u32 %v633_v58, 16  ;;  %1342 = vxpose.xlu1.c.b16.start.end [1/1] (short) (narrow) %v890_v60, 16  ;;  %v934_v14 = vcombine.low %v3627_v50, %v3617_v31  ;;  %v3639_v45 = vpack.i.b16 %v649_v42, %v633_v58  ;;  %v700_v54 = vpack.i.b16 %v699_v18, %v698_v6 }
 0x13c   : > { %v3642_v48 = vrot.slane %v830_v25, %v3497_v15  ;;  %v1138_v53 = vcombine.low %v732_v43, %v748_v16  ;;  %v3648_v0 = vrot.slane %v986_v26, %v3495_v11  ;;  %v3654_v47 = vrot.slane %v1054_v62, %v3495_v11 }
 0x13d   : > { %1390 = vxpose.xlu0.c.b16.start.end [1/1] (short) (narrow) %v829_v20, 16  ;;  %v780_v57 = vpack.i.b16 %v779_v17, %v778_v19  ;;  %v3657_v22 = vrot.slane %v1070_v28, %v3495_v11  ;;  %v1002_v52 = vcombine.low %v700_v54, %v3630_v27  ;;  %v1071_v42 = vcombine.high %v728_v32, %v744_v56 }
 0x13e   : > { %v1139_v58 = vcombine.high %v732_v43, %v748_v16  ;;  %v3662_v40 = vrot.slane %v898_v55, %v3497_v15  ;;  %v1206_v10 = vcombine.low %v3565_v23, %v3639_v45  ;;  %v942_v17 = vrot.slane %v934_v14, %v3495_v11 }
 0x13f   : > { %1406 = vxpose.xlu1.c.b16.start.end [1/1] (short) (narrow) %v897_v29, 16  ;;  %v3671_v62 = vrot.slane %v1122_v3, %v3495_v11  ;;  %v3677_v56 = vrot.slane %v1055_v63, %v3495_v11  ;;  %v935_v32 = vcombine.high %v3627_v50, %v3617_v31  ;;  %v1274_v18 = vcombine.low %v3571_v35, %v780_v57 }
 0x140   : > { %v846_v19 = vcombine.high %v822_v39, %v3431_v21  ;;  %v3688_v3 = vrot.slane %v1123_v4, %v3495_v11  ;;  %v914_v25 = vcombine.high %v890_v60, %v3431_v21  ;;  %v847_v38 = vcombine.high %v829_v20, %v3431_v21 }
 0x141   : > { %1454 = vxpose.xlu0.c.b16.start.end [1/1] (short) (narrow) %v3642_v48, 16  ;;  %v1086_v59 = vcombine.low %v3654_v47, %v3657_v22  ;;  %v3695_v63 = vrot.slane %v1138_v53, %v3495_v11  ;;  %v1010_v31 = vrot.slane %v1002_v52, %v3495_v11  ;;  %v1087_v39 = vcombine.high %v3654_v47, %v3657_v22 }
 0x142   : > { %v3701_v41 = vrot.slane %v1071_v42, %v3495_v11  ;;  %v3704_v61 = vrot.slane %v1139_v58, %v3495_v11  ;;  %v950_v4 = vcombine.low %v3645_v33, %v942_v17  ;;  %v3712_v26 = vrot.slane %v1206_v10, %v3495_v11 }
 0x143   : > { %1470 = vxpose.xlu1.c.b16.start.end [1/1] (short) (narrow) %v3662_v40, 16  ;;  %v1154_v60 = vcombine.low %v3671_v62, %v3695_v63  ;;  %v1155_v20 = vcombine.high %v3671_v62, %v3695_v63  ;;  %v3721_v6 = vrot.slane %v1274_v18, %v3495_v11  ;;  %v1003_v55 = vcombine.high %v700_v54, %v3630_v27 }
 0x144   : > { %v1102_v50 = vcombine.low %v3677_v56, %v3701_v41  ;;  %v1170_v16 = vcombine.low %v3688_v3, %v3704_v61  ;;  %v1103_v28 = vcombine.high %v3677_v56, %v3701_v41  ;;  %v1275_v43 = vcombine.high %v3571_v35, %v780_v57 }
 0x145   : > { %1358 = vxpose.xlu0.c.b16.start.end [1/1] (short) (narrow) %v846_v19, 16  ;;  %v1171_v14 = vcombine.high %v3688_v3, %v3704_v61  ;;  %v3731_v53 = vrot.slane %v1190_v8, %v3495_v11  ;;  %v1207_v52 = vcombine.high %v3565_v23, %v3639_v45  ;;  %v915_v42 = vcombine.high %v897_v29, %v3431_v21 }
 0x146   : > { %v1018_v58 = vcombine.low %v3648_v0, %v1010_v31  ;;  %v3741_v35 = vrot.slane %v1258_v12, %v3495_v11  ;;  %v987_v27 = vcombine.high %v3589_v24, %v3594_v37  ;;  %v933_v8 = vrot.slane %v919_v36, %v3495_v11 }
 0x147   : > { %1374 = vxpose.xlu1.c.b16.start.end [1/1] (short) (narrow) %v914_v25, 16  ;;  %v949_v54 = vrot.slane %v935_v32, %v3495_v11  ;;  %v1222_v23 = vcombine.low %v3731_v53, %v3712_v26  ;;  %v958_v29 = vrot.slane %v950_v4, %v3497_v15  ;;  %v951_v45 = vcombine.high %v3645_v33, %v942_v17 }
 0x148   : > { %v1290_v57 = vcombine.low %v3741_v35, %v3721_v6  ;;  %v3757_v12 = vrot.slane %v1191_v9, %v3495_v11  ;;  %v1017_v24 = vrot.slane %v1003_v55, %v3495_v11  ;;  %v1223_v37 = vcombine.high %v3731_v53, %v3712_v26 }
 0x149   : > { %1422 = vxpose.xlu0.c.b16.start.end [1/1] (short) (narrow) %v847_v38, 16  ;;  %v3766_v36 = vrot.slane %v1259_v13, %v3495_v11  ;;  %v3769_v33 = vrot.slane %v1275_v43, %v3495_v11  ;;  %v1026_v10 = vrot.slane %v1018_v58, %v3497_v15  ;;  %v1019_v44 = vcombine.high %v3648_v0, %v1010_v31 }
 0x14a   : > { %v3774_v5 = vrot.slane %v1207_v52, %v3495_v11  ;;  %v1291_v9 = vcombine.high %v3741_v35, %v3721_v6  ;;  %v966_v17 = vcombine.low %v933_v8, %v949_v54  ;;  %v1001_v32 = vrot.slane %v987_v27, %v3495_v11 }
 0x14b   : > { %1438 = vxpose.xlu1.c.b16.start.end [1/1] (short) (narrow) %v915_v42, 16  ;;  %v1307_v46 = vcombine.high %v3766_v36, %v3769_v33  ;;  %v1306_v7 = vcombine.low %v3766_v36, %v3769_v33  ;;  %v965_v13 = vrot.slane %v951_v45, %v3497_v15  ;;  %v899_v19 = vcombine.high %v3607_v49, %v3611_v2 }
 0x14c   : > { %v1238_v0 = vcombine.low %v3757_v12, %v3774_v5  ;;  %v1239_v18 = vcombine.high %v3757_v12, %v3774_v5  ;;  %v1033_v25 = vrot.slane %v1019_v44, %v3497_v15  ;;  %v1034_v38 = vcombine.low %v1001_v32, %v1017_v24 }
 0x14d   : > { %1582 = vxpose.xlu0.c.b16.start.end [1/1] (short) (narrow) %v958_v29, 16  ;;  %v831_v31 = vcombine.high %v3600_v34, %v3604_v51  ;;  %v974_v4 = vrot.slane %v966_v17, %v3497_v15  ;;  %v967_v55 = vcombine.high %v933_v8, %v949_v54  ;;  %v1035_v52 = vcombine.high %v1001_v32, %v1017_v24 }
 0x14e   : > { %v1042_v43 = vrot.slane %v1034_v38, %v3497_v15  ;;  %v982_v27 = vcombine.high %v958_v29, %v3431_v21  ;;  %v1050_v45 = vcombine.high %v1026_v10, %v3431_v21  ;;  %v983_v44 = vcombine.high %v965_v13, %v3431_v21 }
 0x14f   : > { %1598 = vxpose.xlu1.c.b16.start.end [1/1] (short) (narrow) %v1026_v10, 16  ;;  %v981_v42 = vrot.slane %v967_v55, %v3497_v15  ;;  %v1049_v58 = vrot.slane %v1035_v52, %v3497_v15  ;;  %v1051_v8 = vcombine.high %v1033_v25, %v3431_v21  ;;  %v984_v54 = vcombine.high %v974_v4, %v3431_v21 }
 0x150   : > { %v1052_v24 = vcombine.high %v1042_v43, %v3431_v21  ;;  %v1094_v10 = vrot.slane %v1086_v59, %v3497_v15  ;;  %v1162_v32 = vrot.slane %v1154_v60, %v3497_v15  ;;  %v1110_v59 = vrot.slane %v1102_v50, %v3497_v15 }
 0x151   : > { %1646 = vxpose.xlu0.c.b16.start.end [1/1] (short) (narrow) %v965_v13, 16  ;;  %v985_v17 = vcombine.high %v981_v42, %v3431_v21  ;;  %v1053_v29 = vcombine.high %v1049_v58, %v3431_v21  ;;  %v1101_v13 = vrot.slane %v1087_v39, %v3497_v15  ;;  %v1178_v60 = vrot.slane %v1170_v16, %v3497_v15 }
 0x152   : > { %v1117_v47 = vrot.slane %v1103_v28, %v3497_v15  ;;  %v1185_v22 = vrot.slane %v1171_v14, %v3497_v15  ;;  %v1118_v62 = vcombine.high %v1094_v10, %v3431_v21  ;;  %v1186_v63 = vcombine.high %v1162_v32, %v3431_v21 }
 0x153   : > { %1662 = vxpose.xlu1.c.b16.start.end [1/1] (short) (narrow) %v1033_v25, 16  ;;  %v1169_v25 = vrot.slane %v1155_v20, %v3497_v15  ;;  %v1119_v39 = vcombine.high %v1101_v13, %v3431_v21  ;;  %v1120_v56 = vcombine.high %v1110_v59, %v3431_v21  ;;  %v1188_v41 = vcombine.high %v1178_v60, %v3431_v21 }
 0x154   : > { %v1121_v3 = vcombine.high %v1117_v47, %v3431_v21  ;;  %v1189_v61 = vcombine.high %v1185_v22, %v3431_v21  ;;  %v1230_v50 = vrot.slane %v1222_v23, %v3497_v15  ;;  %v1298_v16 = vrot.slane %v1290_v57, %v3497_v15 }
 0x155   : > { %1710 = vxpose.xlu0.c.b16.start.end [1/1] (short) (narrow) %v974_v4, 16  ;;  %v1187_v20 = vcombine.high %v1169_v25, %v3431_v21  ;;  %v1237_v28 = vrot.slane %v1223_v37, %v3497_v15  ;;  %v1321_v14 = vrot.slane %v1307_v46, %v3497_v15  ;;  %v1314_v23 = vrot.slane %v1306_v7, %v3497_v15 }
 0x156   : > { %v1246_v57 = vrot.slane %v1238_v0, %v3497_v15  ;;  %v1253_v53 = vrot.slane %v1239_v18, %v3497_v15  ;;  %v1254_v33 = vcombine.high %v1230_v50, %v3431_v21  ;;  %v916_v7 = vcombine.high %v3662_v40, %v3431_v21 }
 0x157   : > { %1726 = vxpose.xlu1.c.b16.start.end [1/1] (short) (narrow) %v1042_v43, 16  ;;  %v1324_v26 = vcombine.high %v1314_v23, %v3431_v21  ;;  %v1325_v37 = vcombine.high %v1321_v14, %v3431_v21  ;;  %v1305_v12 = vrot.slane %v1291_v9, %v3497_v15  ;;  %v913_v38 = vrot.slane %v899_v19, %v3497_v15 }
 0x158   : > { %v1255_v40 = vcombine.high %v1237_v28, %v3431_v21  ;;  %v3432_v9 = vmov 0.0   ;;  %v1256_v19 = vcombine.high %v1246_v57, %v3431_v21 }
 0x159   : > { %1774 = vxpose.xlu0.c.b16.start.end [1/1] (short) (narrow) %v981_v42, 16  ;;  %v917_v6 = vcombine.high %v913_v38, %v3431_v21  ;;  %3329 = vmatprep.subr.bf16.mxu0 %v3432_v9 }
 0x15a   : > { %3341 = vmatprep.subr.bf16.mxu1 %v3432_v9  ;;  %3337 = vmatprep.mubr.msk.bf16.mxu0 %vm3433_vm0, %v3432_v9 }
 0x15b   : > { %1790 = vxpose.xlu1.c.b16.start.end [1/1] (short) (narrow) %v1049_v58, 16  ;;  %3349 = vmatprep.mubr.msk.bf16.mxu1 %vm3433_vm0, %v3432_v9 }
 0x15d   : > { %1614 = vxpose.xlu0.c.b16.start.end [1/1] (short) (narrow) %v982_v27, 16 }
 0x15f   : > { %1630 = vxpose.xlu1.c.b16.start.end [1/1] (short) (narrow) %v1050_v45, 16 }
 0x161   : > { %1678 = vxpose.xlu0.c.b16.start.end [1/1] (short) (narrow) %v983_v44, 16 }
 0x163   : > { %1694 = vxpose.xlu1.c.b16.start.end [1/1] (short) (narrow) %v1051_v8, 16 }
 0x165   : > { %1742 = vxpose.xlu0.c.b16.start.end [1/1] (short) (narrow) %v984_v54, 16  ;;  %v1257_v54 = vcombine.high %v1253_v53, %v3431_v21 }
 0x167   : > { %1758 = vxpose.xlu1.c.b16.start.end [1/1] (short) (narrow) %v1052_v24, 16 }
 0x169   : > { %1806 = vxpose.xlu0.c.b16.start.end [1/1] (short) (narrow) %v985_v17, 16 }
 0x16b   : > { %1822 = vxpose.xlu1.c.b16.start.end [1/1] (short) (narrow) %v1053_v29, 16 }
 0x16d   : > { %1838 = vxpose.xlu0.c.b16.start.end [1/1] (short) (narrow) %v1094_v10, 16 }
 0x16f   : > { %1854 = vxpose.xlu1.c.b16.start.end [1/1] (short) (narrow) %v1162_v32, 16 }
 0x171   : > { %1902 = vxpose.xlu0.c.b16.start.end [1/1] (short) (narrow) %v1101_v13, 16  ;;  %v1322_v13 = vcombine.high %v1298_v16, %v3431_v21 }
 0x173   : > { %1918 = vxpose.xlu1.c.b16.start.end [1/1] (short) (narrow) %v1169_v25, 16 }
 0x175   : > { %1966 = vxpose.xlu0.c.b16.start.end [1/1] (short) (narrow) %v1110_v59, 16 }
 0x177   : > { %1982 = vxpose.xlu1.c.b16.start.end [1/1] (short) (narrow) %v1178_v60, 16 }
 0x179   : > { %2030 = vxpose.xlu0.c.b16.start.end [1/1] (short) (narrow) %v1117_v47, 16 }
 0x17b   : > { %2046 = vxpose.xlu1.c.b16.start.end [1/1] (short) (narrow) %v1185_v22, 16  ;;  %v1323_v22 = vcombine.high %v1305_v12, %v3431_v21 }
 0x17d   : > { %1870 = vxpose.xlu0.c.b16.start.end [1/1] (short) (narrow) %v1118_v62, 16 }
 0x17f   : > { %1886 = vxpose.xlu1.c.b16.start.end [1/1] (short) (narrow) %v1186_v63, 16 }
 0x181   : > { %1934 = vxpose.xlu0.c.b16.start.end [1/1] (short) (narrow) %v1119_v39, 16  ;;  %v848_v39 = vcombine.high %v3642_v48, %v3431_v21 }
 0x183   : > { %1950 = vxpose.xlu1.c.b16.start.end [1/1] (short) (narrow) %v1187_v20, 16 }
 0x185   : > { %1998 = vxpose.xlu0.c.b16.start.end [1/1] (short) (narrow) %v1120_v56, 16 }
 0x187   : > { %2014 = vxpose.xlu1.c.b16.start.end [1/1] (short) (narrow) %v1188_v41, 16 }
 0x189   : > { %2062 = vxpose.xlu0.c.b16.start.end [1/1] (short) (narrow) %v1121_v3, 16 }
 0x18b   : > { %2078 = vxpose.xlu1.c.b16.start.end [1/1] (short) (narrow) %v1189_v61, 16  ;;  %v845_v61 = vrot.slane %v831_v31, %v3497_v15 }
 0x18d   : > { %2094 = vxpose.xlu0.c.b16.start.end [1/1] (short) (narrow) %v1230_v50, 16 }
 0x18f   : > { %2110 = vxpose.xlu1.c.b16.start.end [1/1] (short) (narrow) %v1298_v16, 16 }
 0x191   : > { %2158 = vxpose.xlu0.c.b16.start.end [1/1] (short) (narrow) %v1237_v28, 16  ;;  %v849_v28 = vcombine.high %v845_v61, %v3431_v21 }
 0x193   : > { %2302 = vxpose.xlu1.c.b16.start.end [1/1] (short) (narrow) %v1321_v14, 16 }
 0x195   : > { %2222 = vxpose.xlu0.c.b16.start.end [1/1] (short) (narrow) %v1246_v57, 16 }
 0x197   : > { %2270 = vxpose.xlu1.c.b16.start.end [1/1] (short) (narrow) %v1324_v26, 16 }
 0x199   : > { %2286 = vxpose.xlu0.c.b16.start.end [1/1] (short) (narrow) %v1253_v53, 16 }
 0x19b   : > { %v1334_v36 = vpop.trf.xlu0  ;;  %2334 = vxpose.xlu1.c.b16.start.end [1/1] (short) (narrow) %v1325_v37, 16 }
 0x19d   : > { %2126 = vxpose.xlu0.c.b16.start.end [1/1] (short) (narrow) %v1254_v33, 16  ;;  %v1350_v46 = vpop.trf.xlu1 }
 0x19f   : > { %v1398_v0 = vpop.trf.xlu0  ;;  %1502 = vxpose.xlu1.c.b16.start.end [1/1] (short) (narrow) %v916_v7, 16 }
 0x1a0   : > { %v2350_v5 = vcombine.low %v1334_v36, %v1398_v0 }
 0x1a1   : > { %2174 = vxpose.xlu0.c.b16.start.end [1/1] (short) (narrow) %v1305_v12, 16  ;;  %v1414_v18 = vpop.trf.xlu1 }
 0x1a2   : > { %v2399_v4 = vcombine.low %v1350_v46, %v1414_v18  ;;  %v3896_v58 = vrot.slane %v2350_v5, %v3495_v11 }
 0x1a3   : > { %v3886_v55 = vpop.trf.xlu0  ;;  %1534 = vxpose.xlu1.c.b16.start.end [1/1] (short) (narrow) %v913_v38, 16 }
 0x1a4   : > { %v3899_v27 = vrot.slane %v2399_v4, %v3495_v11 }
 0x1a5   : > { %2190 = vxpose.xlu0.c.b16.start.end [1/1] (short) (narrow) %v1255_v40, 16  ;;  %v3889_v43 = vpop.trf.xlu1 }
 0x1a7   : > { %v1366_v35 = vpop.trf.xlu0  ;;  %1566 = vxpose.xlu1.c.b16.start.end [1/1] (short) (narrow) %v917_v6, 16 }
 0x1a9   : > { %2238 = vxpose.xlu0.c.b16.start.end [1/1] (short) (narrow) %v1314_v23, 16  ;;  %v1382_v49 = vpop.trf.xlu1 }
 0x1ab   : > { %v1430_v2 = vpop.trf.xlu0 }
 0x1ac   : > { %v2358_v52 = vcombine.low %v1366_v35, %v1430_v2 }
 0x1ad   : > { %2254 = vxpose.xlu0.c.b16.start.end [1/1] (short) (narrow) %v1256_v19, 16  ;;  %v1446_v42 = vpop.trf.xlu1 }
 0x1ae   : > { %v3902_v45 = vrot.slane %v2358_v52, %v3495_v11  ;;  %v2407_v44 = vcombine.low %v1382_v49, %v1446_v42 }
 0x1af   : > { %v1590_v8 = vpop.trf.xlu0 }
 0x1b0   : > { %v2382_v24 = vcombine.low %v3896_v58, %v3902_v45  ;;  %v3908_v17 = vrot.slane %v2407_v44, %v3495_v11 }
 0x1b1   : > { %2318 = vxpose.xlu0.c.b16.start.end [1/1] (short) (narrow) %v1257_v54, 16  ;;  %v1606_v29 = vpop.trf.xlu1 }
 0x1b2   : > { %v2431_v10 = vcombine.low %v3899_v27, %v3908_v17 }
 0x1b3   : > { %v1654_v32 = vpop.trf.xlu0 }
 0x1b4   : > { %v2448_v25 = vcombine.low %v1590_v8, %v1654_v32 }
 0x1b5   : > { %2142 = vxpose.xlu0.c.b16.start.end [1/1] (short) (narrow) %v1322_v13, 16  ;;  %v1670_v59 = vpop.trf.xlu1 }
 0x1b6   : > { %v2497_v60 = vcombine.low %v1606_v29, %v1670_v59  ;;  %v2455_v48 = vrot.slane %v2448_v25, %v3495_v11 }
 0x1b7   : > { %v1718_v47 = vpop.trf.xlu0 }
 0x1b8   : > { %v2504_v57 = vrot.slane %v2497_v60, %v3495_v11 }
 0x1b9   : > { %2206 = vxpose.xlu0.c.b16.start.end [1/1] (short) (narrow) %v1323_v22, 16  ;;  %v1734_v62 = vpop.trf.xlu1 }
 0x1bb   : > { %v1782_v63 = vpop.trf.xlu0 }
 0x1bc   : > { %v2464_v20 = vcombine.low %v1718_v47, %v1782_v63 }
 0x1bd   : > { %1486 = vxpose.xlu0.c.b16.start.end [1/1] (short) (narrow) %v848_v39, 16  ;;  %v1798_v56 = vpop.trf.xlu1 }
 0x1be   : > { %v2513_v41 = vcombine.low %v1734_v62, %v1798_v56  ;;  %v2471_v0 = vrot.slane %v2464_v20, %v3495_v11 }
 0x1bf   : > { %v1622_v3 = vpop.trf.xlu0 }
 0x1c0   : > { %v2520_v12 = vrot.slane %v2513_v41, %v3495_v11 }
 0x1c1   : > { %1518 = vxpose.xlu0.c.b16.start.end [1/1] (short) (narrow) %v845_v61, 16  ;;  %v1638_v50 = vpop.trf.xlu1 }
 0x1c3   : > { %v1686_v16 = vpop.trf.xlu0 }
 0x1c4   : > { %v2456_v14 = vcombine.low %v1622_v3, %v1686_v16 }
 0x1c5   : > { %1550 = vxpose.xlu0.c.b16.start.end [1/1] (short) (narrow) %v849_v28, 16  ;;  %v1702_v23 = vpop.trf.xlu1 }
 0x1c6   : > { %v2463_v26 = vrot.slane %v2456_v14, %v3495_v11  ;;  %v2505_v53 = vcombine.low %v1638_v50, %v1702_v23 }
 0x1c7   : > { %v1750_v37 = vpop.trf.xlu0 }
 0x1c8   : > { %v2480_v36 = vcombine.low %v2455_v48, %v2463_v26  ;;  %v2512_v34 = vrot.slane %v2505_v53, %v3495_v11 }
 0x1c9   : > { %v1766_v51 = vpop.trf.xlu1 }
 0x1ca   : > { %v2529_v31 = vcombine.low %v2504_v57, %v2512_v34  ;;  %v2487_v35 = vrot.slane %v2480_v36, %v3497_v15 }
 0x1cb   : > { %v1814_v33 = vpop.trf.xlu0 }
 0x1cc   : > { %v2472_v46 = vcombine.low %v1750_v37, %v1814_v33  ;;  %v2536_v49 = vrot.slane %v2529_v31, %v3497_v15 }
 0x1cd   : > { %v1830_v7 = vpop.trf.xlu1 }
 0x1ce   : > { %v2479_v5 = vrot.slane %v2472_v46, %v3495_v11  ;;  %v2521_v18 = vcombine.low %v1766_v51, %v1830_v7 }
 0x1cf   : > { %v1846_v38 = vpop.trf.xlu0 }
 0x1d0   : > { %v2488_v4 = vcombine.low %v2471_v0, %v2479_v5  ;;  %v2528_v40 = vrot.slane %v2521_v18, %v3495_v11 }
 0x1d1   : > { %v3933_v6 = vpop.trf.xlu1 }
 0x1d2   : > { %v2495_v2 = vrot.slane %v2488_v4, %v3497_v15  ;;  %v2537_v19 = vcombine.low %v2520_v12, %v2528_v40 }
 0x1d3   : > { %v1910_v52 = vpop.trf.xlu0 }
 0x1d4   : > { %v2544_v42 = vrot.slane %v2537_v19, %v3497_v15  ;;  %v2546_v44 = vcombine.low %v1846_v38, %v1910_v52  ;;  %v3939_v8 = vcombine.low %v2487_v35, %v2495_v2  ;;  %v298_v2 = vshrl.u32 %v3490_v1, 16 }
 0x1d5   : > { %v3941_v54 = vpop.trf.xlu1  ;;  %v299_v19 = vshrl.u32 %v3511_v30, 16 }
 0x1d6   : > { %v3943_v29 = vcombine.low %v2536_v49, %v2544_v42  ;;  %v2754_v25 = vshrl.u32 %v3939_v8, 16  ;;  %v2553_v61 = vrot.slane %v2546_v44, %v3495_v11  ;;  %v297_v42 = vpack.i.b16 %v3511_v30, %v3490_v1 }
 0x1d7   : > { %v1974_v32 = vpop.trf.xlu0  ;;  %v300_v44 = vpack.i.b16 %v299_v19, %v298_v2 }
 0x1d8   : > { %v2752_v13 = vpack.i.b16 %v3943_v29, %v3939_v8  ;;  %v2755_v59 = vshrl.u32 %v3943_v29, 16  ;;  %v3306_v29 = vld [vmem:[%s282_s29] ss:$0 sm:$0xff] }
 0x1d9   : > { %v1990_v60 = vpop.trf.xlu1  ;;  %v333_v1 = vrot.slane %v300_v44, %v3495_v11 }
 0x1da   : > { %v3949_v47 = vpack.i.b16 %v2755_v59, %v2754_v25 }
 0x1db   : > { %v2038_v22 = vpop.trf.xlu0  ;;  %v341_v19 = vrot.slane %v333_v1, %v3497_v15 }
 0x1dc   : > { %v2562_v62 = vcombine.low %v1974_v32, %v2038_v22  ;;  %v2595_v32 = vcombine.low %v3933_v6, %v3941_v54 }
 0x1dd   : > { %v2054_v63 = vpop.trf.xlu1 }
 0x1de   : > { %v2569_v57 = vrot.slane %v2562_v62, %v3495_v11  ;;  %v2611_v25 = vcombine.low %v1990_v60, %v2054_v63  ;;  %v2602_v30 = vrot.slane %v2595_v32, %v3495_v11 }
 0x1df   : > { %v1878_v39 = vpop.trf.xlu0 }
 0x1e0   : > { %v2618_v6 = vrot.slane %v2611_v25, %v3495_v11 }
 0x1e1   : > { %v1894_v20 = vpop.trf.xlu1 }
 0x1e3   : > { %v1942_v56 = vpop.trf.xlu0 }
 0x1e4   : > { %v2554_v41 = vcombine.low %v1878_v39, %v1942_v56 }
 0x1e5   : > { %v1958_v3 = vpop.trf.xlu1 }
 0x1e6   : > { %v2561_v50 = vrot.slane %v2554_v41, %v3495_v11  ;;  %v2603_v59 = vcombine.low %v1894_v20, %v1958_v3 }
 0x1e7   : > { %v2006_v16 = vpop.trf.xlu0 }
 0x1e8   : > { %v2578_v28 = vcombine.low %v2553_v61, %v2561_v50  ;;  %v308_v50 = vrot.slane %v297_v42, %v3495_v11  ;;  %v2610_v60 = vrot.slane %v2603_v59, %v3495_v11 }
 0x1e9   : > { %v2022_v14 = vpop.trf.xlu1 }
 0x1ea   : > { %v2585_v34 = vrot.slane %v2578_v28, %v3497_v15 }
 0x1eb   : > { %v2070_v23 = vpop.trf.xlu0 }
 0x1ec   : > { %v2570_v48 = vcombine.low %v2006_v16, %v2070_v23 }
 0x1ed   : > { %v2086_v36 = vpop.trf.xlu1 }
 0x1ee   : > { %v2577_v26 = vrot.slane %v2570_v48, %v3495_v11  ;;  %v2619_v62 = vcombine.low %v2022_v14, %v2086_v36  ;;  %v309_v14 = vcombine.high %v308_v50, %v3431_v21 }
 0x1ef   : > { %v2102_v53 = vpop.trf.xlu0 }
 0x1f0   : > { %v2586_v37 = vcombine.low %v2569_v57, %v2577_v26  ;;  %v2626_v63 = vrot.slane %v2619_v62, %v3495_v11 }
 0x1f1   : > { %v2118_v46 = vpop.trf.xlu1 }
 0x1f2   : > { %v2593_v51 = vrot.slane %v2586_v37, %v3497_v15 }
 0x1f3   : > { %v2166_v31 = vpop.trf.xlu0 }
 0x1f4   : > { %v3957_v33 = vcombine.low %v2585_v34, %v2593_v51  ;;  %v2644_v16 = vcombine.low %v2102_v53, %v2166_v31  ;;  %v334_v51 = vcombine.high %v333_v1, %v3431_v21 }
 0x1f5   : > { %v2310_v12 = vpop.trf.xlu1 }
 0x1f6   : > { %v2651_v57 = vrot.slane %v2644_v16, %v3495_v11 }
 0x1f7   : > { %v2230_v7 = vpop.trf.xlu0 }
 0x1f9   : > { %v2278_v18 = vpop.trf.xlu1 }
 0x1fb   : > { %v2294_v0 = vpop.trf.xlu0 }
 0x1fc   : > { %v2660_v39 = vcombine.low %v2230_v7, %v2294_v0  ;;  %v2627_v7 = vcombine.low %v2602_v30, %v2610_v60  ;;  %v2635_v0 = vcombine.low %v2618_v6, %v2626_v63 }
 0x1fd   : > { %v2342_v40 = vpop.trf.xlu1 }
 0x1fe   : > { %v2717_v28 = vcombine.low %v2278_v18, %v2342_v40  ;;  %v2667_v20 = vrot.slane %v2660_v39, %v3495_v11  ;;  %v316_v18 = vrot.slane %v308_v50, %v3497_v15  ;;  %v2634_v32 = vrot.slane %v2627_v7, %v3497_v15 }
 0x1ff   : > { %v2134_v5 = vpop.trf.xlu0  ;;  %v2642_v25 = vrot.slane %v2635_v0, %v3497_v15 }
 0x200   : > { %v2724_v26 = vrot.slane %v2717_v28, %v3495_v11 }
 0x201   : > { %v1510_v49 = vpop.trf.xlu1 }
 0x203   : > { %v2182_v38 = vpop.trf.xlu0 }
 0x204   : > { %v2693_v53 = vcombine.low %v2118_v46, %v2182_v38 }
 0x205   : > { %v1542_v56 = vpop.trf.xlu1 }
 0x206   : > { %v2415_v42 = vcombine.low %v3889_v43, %v1542_v56 }
 0x207   : > { %v2198_v4 = vpop.trf.xlu0 }
 0x208   : > { %v2652_v41 = vcombine.low %v2134_v5, %v2198_v4  ;;  %v323_v4 = vrot.slane %v309_v14, %v3497_v15  ;;  %v2422_v43 = vrot.slane %v2415_v42, %v3495_v11 }
 0x209   : > { %v1574_v37 = vpop.trf.xlu1 }
 0x20a   : > { %v2659_v3 = vrot.slane %v2652_v41, %v3495_v11  ;;  %v2423_v40 = vcombine.low %v1510_v49, %v1574_v37  ;;  %v472_v62 = vcombine.low %v316_v18, %v323_v4  ;;  %v3302_v50 = vcombine.high %v316_v18, %v323_v4 }
 0x20b   : > { %v2246_v35 = vpop.trf.xlu0  ;;  %v2389_v4 = vrot.slane %v2382_v24, %v3497_v15 }
 0x20c   : > { %v2709_v23 = vcombine.low %v2246_v35, %v2310_v12  ;;  %v2676_v12 = vcombine.low %v2651_v57, %v2659_v3  ;;  %v2700_v35 = vrot.slane %v2693_v53, %v3495_v11  ;;  %v479_v63 = vrot.slane %v472_v62, %v3495_v11 }
 0x20e   : > { %v2716_v36 = vrot.slane %v2709_v23, %v3495_v11  ;;  %v2683_v49 = vrot.slane %v2676_v12, %v3497_v15  ;;  %v2438_v12 = vrot.slane %v2431_v10, %v3497_v15 }
 0x20f   : > { %v2262_v52 = vpop.trf.xlu0 }
 0x210   : > { %v2733_v2 = vcombine.low %v2716_v36, %v2724_v26 }
 0x213   : > { %v2326_v22 = vpop.trf.xlu0 }
 0x214   : > { %v2668_v61 = vcombine.low %v2262_v52, %v2326_v22  ;;  %v348_v52 = vrot.slane %v334_v51, %v3497_v15  ;;  %v2430_v22 = vrot.slane %v2423_v40, %v3495_v11 }
 0x216   : > { %v2675_v48 = vrot.slane %v2668_v61, %v3495_v11  ;;  %v2740_v61 = vrot.slane %v2733_v2, %v3497_v15  ;;  %v496_v16 = vcombine.low %v341_v19, %v348_v52  ;;  %v3303_v28 = vcombine.high %v341_v19, %v348_v52 }
 0x217   : > { %v2150_v54 = vpop.trf.xlu0  ;;  %v2439_v1 = vcombine.low %v2422_v43, %v2430_v22 }
 0x218   : > { %v2684_v34 = vcombine.low %v2667_v20, %v2675_v48  ;;  %v2643_v48 = vcombine.low %v2634_v32, %v2642_v25  ;;  %v487_v20 = vrot.slane %v3302_v50, %v3495_v11  ;;  %v503_v14 = vrot.slane %v496_v16, %v3495_v11 }
 0x219   : > { %v511_v57 = vrot.slane %v3303_v28, %v3495_v11  ;;  %v2446_v36 = vrot.slane %v2439_v1, %v3497_v15 }
 0x21a   : > { %v2691_v38 = vrot.slane %v2684_v34, %v3497_v15  ;;  %v2763_v37 = vshrl.u32 %v2643_v48, 16  ;;  %v488_v7 = vcombine.low %v479_v63, %v487_v20 }
 0x21b   : > { %v2214_v31 = vpop.trf.xlu0  ;;  %v512_v0 = vcombine.low %v503_v14, %v511_v57  ;;  %v2447_v40 = vcombine.low %v2438_v12, %v2446_v36 }
 0x21c   : > { %v2701_v5 = vcombine.low %v2150_v54, %v2214_v31  ;;  %v2692_v39 = vcombine.low %v2683_v49, %v2691_v38  ;;  %v2760_v31 = vpack.i.b16 %v2643_v48, %v3957_v33 }
 0x21d   : > { %v519_v27 = vrot.slane %v512_v0, %v3497_v15  ;;  %v2747_v24 = vshrl.u32 %v2447_v40, 16 }
 0x21e   : > { %v2708_v46 = vrot.slane %v2701_v5, %v3495_v11  ;;  %v2770_v54 = vshrl.u32 %v2692_v39, 16 }
 0x21f   : > { %v1494_v44 = vpop.trf.xlu0  ;;  %v524_v2 = vshrl.u32 %v519_v27, 16 }
 0x220   : > { %v2725_v59 = vcombine.low %v2700_v35, %v2708_v46  ;;  %v495_v35 = vrot.slane %v488_v7, %v3497_v15 }
 0x222   : > { %v2732_v41 = vrot.slane %v2725_v59, %v3497_v15  ;;  %v523_v10 = vshrl.u32 %v495_v35, 16  ;;  %v522_v38 = vpack.i.b16 %v519_v27, %v495_v35 }
 0x223   : > { %v1526_v56 = vpop.trf.xlu0 }
 0x224   : > { %v2741_v23 = vcombine.low %v2732_v41, %v2740_v61  ;;  %v2366_v30 = vcombine.low %v3886_v55, %v1526_v56  ;;  %v2762_v55 = vshrl.u32 %v3957_v33, 16  ;;  %v525_v8 = vpack.i.b16 %v524_v2, %v523_v10 }
 0x226   : > { %v2768_v6 = vpack.i.b16 %v2741_v23, %v2692_v39  ;;  %v2771_v60 = vshrl.u32 %v2741_v23, 16  ;;  %v2373_v34 = vrot.slane %v2366_v30, %v3495_v11  ;;  %v2764_v18 = vpack.i.b16 %v2763_v37, %v2762_v55 }
 0x227   : > { %v1558_v3 = vpop.trf.xlu0 }
 0x228   : > { %v2374_v26 = vcombine.low %v1494_v44, %v1558_v3  ;;  %3330 = vmatpush3.bf16.msra.mxu0 %v2768_v6  ;;  %v2772_v53 = vpack.i.b16 %v2771_v60, %v2770_v54  ;;  %v3301_v6 = vld [vmem:[%s3233_s6 + $0x8] sm:$0xf] }
 0x229   : > { %3331 = vmatprep.subr.bf16.mxu0 %v3432_v9  ;;  %v418_v60 = vshrl.u32 %v3301_v6, 16 }
 0x22a   : > { %v2381_v51 = vrot.slane %v2374_v26, %v3495_v11  ;;  %3342 = vmatpush3.bf16.msra.mxu1 %v2772_v53 }
 0x22b   : > { %3343 = vmatprep.subr.bf16.mxu1 %v3432_v9 }
 0x22c   : > { %v2390_v5 = vcombine.low %v2373_v34, %v2381_v51  ;;  %3332 = vmatpush3.bf16.msra.mxu0 %v2760_v31 }
 0x22d   : > { %3333 = vmatprep.subr.bf16.mxu0 %v3432_v9 }
 0x22e   : > { %v2397_v33 = vrot.slane %v2390_v5, %v3497_v15  ;;  %3344 = vmatpush3.bf16.msra.mxu1 %v2764_v18 }
 0x22f   : > { %3345 = vmatprep.subr.bf16.mxu1 %v3432_v9 }
 0x230   : > { %3334 = vmatpush3.bf16.msra.mxu0 %v2752_v13  ;;  %v2398_v17 = vcombine.low %v2389_v4, %v2397_v33 }
 0x231   : > { %3335 = vmatprep.subr.bf16.mxu0 %v3432_v9 }
 0x232   : > { %3346 = vmatpush3.bf16.msra.mxu1 %v3949_v47  ;;  %v2744_v58 = vpack.i.b16 %v2447_v40, %v2398_v17  ;;  %v2746_v45 = vshrl.u32 %v2398_v17, 16 }
 0x233   : > { %3347 = vmatprep.subr.bf16.mxu1 %v3432_v9 }
 0x234   : > { %3336 = vmatpush3.bf16.msra.mxu0 %v2744_v58  ;;  %v2748_v46 = vpack.i.b16 %v2747_v24, %v2746_v45 }
 0x235   : > { %3353 = vmatprep.subr.bf16.mxu0 %v3432_v9 }
 0x236   : > { %3348 = vmatpush3.bf16.msra.mxu1 %v2748_v46 }
 0x237   : > { %3338 = vmatmul.mubr.msk.bf16.vlgmr.msra.gmra.mxu0 %vm2774_vm1, %v522_v38  ;;  %3359 = vmatprep.subr.bf16.mxu1 %v3432_v9 }
 0x238   : > { %3355 = vmatprep.mubr.msk.bf16.mxu0 %vm3433_vm0, %v3432_v9 }
 0x239   : > { %3350 = vmatmul.mubr.msk.bf16.vlgmr.msra.gmra.mxu1 %vm2774_vm1, %v525_v8 }
 0x23a   : > { %3361 = vmatprep.mubr.msk.bf16.mxu1 %vm3433_vm0, %v3432_v9 }
 0x2f7   : > { %v2812_v13 = vpop.f32.mrf.mxu0 }
 0x2f8   : > { %v2861_v47 = vmul.f32 0.125, %v2812_v13 }
 0x2f9   : > { %v3339_v19 = vpop.f32.mrf.mxu0  ;;  %v2855_v52 = vpop.f32.mrf.mxu1 }
 0x2fa   : > { %v2869_v42 = vadd.f32 %v3306_v29, %v2861_v47  ;;  %v2862_v44 = vmul.f32 0.125, %v2855_v52 }
 0x2fb   : > { %v2815_v32 = vpop.f32.mrf.mxu0  ;;  %v3351_v25 = vpop.f32.mrf.mxu1 }
 0x2fc   : > { %v2870_v59 = vadd.f32 %v3306_v29, %v2862_v44  ;;  %v2872_v49 = vsel %vm2871_vm2, %v2869_v42, -inf }
 0x2fd   : > { %v2858_v22 = vpop.f32.mrf.mxu1  ;;  %2873 = vmax.xlane.f32.xlu0 %v2872_v49  ;;  %v3340_v62 = vpop.f32.mrf.mxu0 }
 0x2fe   : > { %v2875_v39 = vsel %vm2871_vm2, %v2870_v59, -inf }
 0x2ff   : > { %2876 = vmax.xlane.f32.xlu1 %v2875_v39  ;;  %v3352_v41 = vpop.f32.mrf.mxu1 }
 0x386   : > { %v2874_v61 = vpop.xlane.xlu0 %2873 }
 0x387   : > { %v2878_v50 = vsub.f32 %v2869_v42, %v2874_v61 }
 0x388   : > { %v2877_v16 = vpop.xlane.xlu1 %2876 }
 0x389   : > { %v2880_v28 = vmul.f32 1.442695, %v2878_v50  ;;  %v2879_v43 = vsub.f32 %v2870_v59, %v2877_v16 }
 0x38b   : > { %3396 = vpow2.f32 %v2880_v28  ;;  %v2882_v56 = vmul.f32 1.442695, %v2879_v43 }
 0x38d   : > { %3398 = vpow2.f32 %v2882_v56 }
 0x398   : > { %v3397_v23 = vpop.eup %3396 }
 0x399   : > { %v2884_v48 = vsel %vm2871_vm2, %v3397_v23, 0.0 }
 0x39a   : > { %v3399_v1 = vpop.eup %3398  ;;  %2885 = vadd.xlane.f32.xlu0 %v2884_v48 }
 0x39b   : > { %v2887_v30 = vsel %vm2871_vm2, %v3399_v1, 0.0 }
 0x39c   : > { %2888 = vadd.xlane.f32.xlu1 %v2887_v30 }
 0x3b0   : > { %413 = vrot.lane.b32.xlu0 %v3301_v6, %s3428_s26 }
 0x423   : > { %v2886_v54 = vpop.xlane.xlu0 %2885 }
 0x424   : > { %3400 = vrcp.f32 %v2886_v54 }
 0x425   : > { %v2889_v14 = vpop.xlane.xlu1 %2888 }
 0x426   : > { %3402 = vrcp.f32 %v2889_v14 }
 0x427   : > { %v414_v63 = vpop.permute.xlu0 %413 }
 0x428   : > { %v417_v20 = vpack.i.b16 %v414_v63, %v3301_v6  ;;  %v419_v3 = vshrl.u32 %v414_v63, 16 }
 0x42a   : > { %v420_v57 = vpack.i.b16 %v419_v3, %v418_v60  ;;  %v428_v26 = vrot.slane %v417_v20, %v3495_v11 }
 0x42c   : > { %v429_v53 = vcombine.high %v428_v26, %v3431_v21  ;;  %v453_v37 = vrot.slane %v420_v57, %v3495_v11  ;;  %v436_v55 = vrot.slane %v428_v26, %v3497_v15 }
 0x42e   : > { %v443_v36 = vrot.slane %v429_v53, %v3497_v15  ;;  %v454_v34 = vcombine.high %v453_v37, %v3431_v21  ;;  %v461_v51 = vrot.slane %v453_v37, %v3497_v15 }
 0x430   : > { %v468_v31 = vrot.slane %v454_v34, %v3497_v15  ;;  %v2896_v7 = vcombine.low %v436_v55, %v443_v36  ;;  %v3307_v0 = vcombine.high %v436_v55, %v443_v36 }
 0x431   : > { %v3401_v17 = vpop.eup %3400 }
 0x432   : > { %v2903_v12 = vrot.slane %v2896_v7, %v3495_v11  ;;  %v2911_v5 = vrot.slane %v3307_v0, %v3495_v11  ;;  %v2920_v18 = vcombine.low %v461_v51, %v468_v31  ;;  %v3308_v4 = vcombine.high %v461_v51, %v468_v31 }
 0x433   : > { %v3403_v45 = vpop.eup %3402  ;;  %v2892_v46 = vmul.f32 %v3401_v17, %v3397_v23 }
 0x434   : > { %v2927_v33 = vrot.slane %v2920_v18, %v3495_v11  ;;  %v2935_v40 = vrot.slane %v3308_v4, %v3495_v11  ;;  %v2912_v35 = vcombine.low %v2903_v12, %v2911_v5  ;;  %v2893_v29 = vmul.f32 %v3403_v45, %v3399_v1 }
 0x435   : > { %v2894_v47 = vpack.c.bf16 %v2892_v46, %v2892_v46 }
 0x436   : > { %v2919_v27 = vrot.slane %v2912_v35, %v3497_v15  ;;  %v2936_v21 = vcombine.low %v2927_v33, %v2935_v40  ;;  %v2895_v19 = vpack.c.bf16 %v2893_v29, %v2893_v29 }
 0x438   : > { %v2943_v58 = vrot.slane %v2936_v21, %v3497_v15  ;;  %v2947_v10 = vshrl.u32 %v2919_v27, 16 }
 0x43a   : > { %v2946_v24 = vpack.i.b16 %v2943_v58, %v2919_v27  ;;  %v2948_v2 = vshrl.u32 %v2943_v58, 16 }
 0x43c   : > { %v2955_v38 = vsel %vm2953_vm3, %v2946_v24, 0  ;;  %v2949_v8 = vpack.i.b16 %v2948_v2, %v2947_v10 }
 0x43d   : > { %3354 = vmatpush3.bf16.msra.mxu0 %v2955_v38 }
 0x43e   : > { %v3001_v13 = vsel %vm2953_vm3, %v2949_v8, 0 }
 0x43f   : > { %3360 = vmatpush3.bf16.msra.mxu1 %v3001_v13 }
 0x440   : > { %3356 = vmatmul.mubr.msk.bf16.vlgmr.msra.gmra.mxu0 %vm2871_vm2, %v2894_v47 }
 0x442   : > { %3362 = vmatmul.mubr.msk.bf16.vlgmr.msra.gmra.mxu1 %vm2871_vm2, %v2895_v19 }
 0x500   : > { %v2991_v52 = vpop.f32.mrf.mxu0 }
 0x501   : > { %v3043_v42 = vcombine.high %v2991_v52, %v3432_v9  ;;  %v3050_v25 = vrot.slane %v2991_v52, %v3495_v11 }
 0x502   : > { %v3357_v44 = vpop.f32.mrf.mxu0  ;;  %v3037_v32 = vpop.f32.mrf.mxu1 }
 0x503   : > { %v3058_v59 = vcombine.high %v3037_v32, %v3432_v9  ;;  %v3065_v49 = vrot.slane %v3037_v32, %v3495_v11  ;;  %v3057_v39 = vrot.slane %v3043_v42, %v3495_v11 }
 0x504   : > { %v2994_v22 = vpop.f32.mrf.mxu0  ;;  %v3363_v62 = vpop.f32.mrf.mxu1 }
 0x505   : > { %v3072_v41 = vrot.slane %v3058_v59, %v3495_v11  ;;  %v3073_v61 = vcombine.low %v3050_v25, %v3065_v49  ;;  %v3074_v50 = vcombine.high %v3050_v25, %v3065_v49 }
 0x506   : > { %v3358_v16 = vpop.f32.mrf.mxu0  ;;  %v3040_v28 = vpop.f32.mrf.mxu1 }
 0x507   : > { %v3081_v43 = vrot.slane %v3073_v61, %v3497_v15  ;;  %v3088_v56 = vrot.slane %v3074_v50, %v3497_v15  ;;  %v3089_v23 = vcombine.low %v3057_v39, %v3072_v41  ;;  %v3090_v48 = vcombine.high %v3057_v39, %v3072_v41 }
 0x508   : > { %v3364_v1 = vpop.f32.mrf.mxu1 }
 0x509   : > { %v3097_v9 = vrot.slane %v3089_v23, %v3497_v15  ;;  %v3104_v30 = vrot.slane %v3090_v48, %v3497_v15  ;;  %v3109_v6 = vcombine.low %v3081_v43, %v3088_v56  ;;  %v3311_v54 = vcombine.high %v3081_v43, %v3088_v56 }
 0x50b   : > { %v3116_v60 = vrot.slane %v3109_v6, %v3495_v11  ;;  %v3124_v63 = vrot.slane %v3311_v54, %v3495_v11  ;;  %v3125_v20 = vcombine.low %v3097_v9, %v3104_v30  ;;  %v3312_v3 = vcombine.high %v3097_v9, %v3104_v30 }
 0x50d   : > { %v3132_v14 = vrot.slane %v3125_v20, %v3495_v11  ;;  %v3140_v57 = vrot.slane %v3312_v3, %v3495_v11  ;;  %v3141_v26 = vcombine.low %v3116_v60, %v3124_v63 }
 0x50f   : > { %v3149_v53 = vcombine.low %v3132_v14, %v3140_v57  ;;  %v3148_v37 = vrot.slane %v3141_v26, %v3497_v15 }
 0x511   : > { %v3156_v55 = vrot.slane %v3149_v53, %v3497_v15 }
 0x513   : > { %v3158_v36 = vcombine.high %v3148_v37, %v3156_v55  ;;  %v3157_v34 = vcombine.low %v3148_v37, %v3156_v55 }
 0x515   : > { %3160 = vrot.lane.b32.xlu1 %v3158_v36, %s3428_s26 }
 0x587   : > { %v3161_v51 = vpop.permute.xlu1 %3160 }
 0x588   : > { %v3163_v31 = vsel %vm2774_vm1, %v3157_v34, %v3161_v51 }
 0x589   : > { %v3164_v7 = vpack.c.bf16 %v3163_v31, %v3163_v31 }
 0x58b   : > { %3165 = vst [vmem:[%s289_s10] sm:$0xf] %v3164_v7 }
 0x58c PF: > { %s14_s17 = sadd.s32 1, %s3426_s17   ;;  %s4098_s15 = smov %s3422_s16 }
 0x58d   : > { %p11_p5 = scmp.ge.s32.totalorder %s14_s17, 4   ;;  %s4099_s16 = smov %s4101_s18 }
 0x58f   :  { %13 = sbr.rel (!%p11_p5) target bundleno = 2 (0x2), region = 75 }

// kernel: bert_class_forward.14
= control target key start
LH: loop header
LB: loop body
LE: loop exit
PB: predicated region body
PF: predicated region fallthrough
CT: control target
= control target key end

     0   :  { %v1052_v1 = vmov 0   ;;  %s1367_s1 = inlined_call_operand.vmem [shape: bf16[128,512], index: 1, kind: input, shape index: {}]   ;;  %s1368_s0 = inlined_call_operand.vmem [shape: bf16[16,128], index: 0, kind: input, shape index: {}, may-alias: {0,5}]   ;;  %s1369_s3 = inlined_call_operand.vmem [shape: bf16[512,128], index: 3, kind: input, shape index: {}]   ;;  %s1370_s2 = inlined_call_operand.vmem [shape: f32[1,512], index: 2, kind: input, shape index: {}]   ;;  %s1371_s4 = inlined_call_operand.vmem [shape: f32[1,128], index: 4, kind: input, shape index: {}]   ;;  %s1372_s5 = inlined_call_operand.vmem [shape: bf16[16,128], index: 5, kind: input, shape index: {}, may-alias: {0,5}]   ;;  %s1373_s6 = inlined_call_operand.vmem [shape: f32[1,128], index: 6, kind: input, shape index: {}]   ;;  %s1374_s7 = inlined_call_operand.vmem [shape: f32[1,128], index: 7, kind: input, shape index: {}]   ;;  %s1375_s8 = inlined_call_operand.vmem [shape: bf16[16,128], index: 8, kind: output, shape index: {}]  }
   0x1   :  { %v951_v0 = vld [vmem:[%s1367_s1 + $0xe4] ss:$16 sps:$4 sm:$0xff]   ;;  %284 = vmatprep.mubr.bf16.mxu0 %v1052_v1  ;;  %327 = vmatprep.mubr.bf16.mxu1 %v1052_v1  ;;  %v953_v2 = vld [vmem:[%s1367_s1 + $0xec] ss:$16 sps:$4 sm:$0xff]   ;;  %v955_v3 = vld [vmem:[%s1367_s1 + $0xe0] ss:$16 sps:$4 sm:$0xff]  }
   0x2   :  { %252 = vmatprep.subr.bf16.mxu0 %v951_v0  ;;  %v956_v4 = vld [vmem:[%s1367_s1 + $0xe8] ss:$16 sps:$4 sm:$0xff]   ;;  %295 = vmatprep.subr.bf16.mxu1 %v953_v2  ;;  %v957_v5 = vld [vmem:[%s1367_s1 + $0xc4] ss:$16 sps:$4 sm:$0xff]   ;;  %v959_v6 = vld [vmem:[%s1367_s1 + $0xcc] ss:$16 sps:$4 sm:$0xff]   ;;  %v66_v2 = vlaneseq }
   0x3   :  { %253 = vmatpush1.bf16.msra.mxu0 %v955_v3  ;;  %296 = vmatpush1.bf16.msra.mxu1 %v956_v4  ;;  %v961_v7 = vld [vmem:[%s1367_s1 + $0xc0] ss:$16 sps:$4 sm:$0xff]   ;;  %v962_v8 = vld [vmem:[%s1367_s1 + $0xc8] ss:$16 sps:$4 sm:$0xff]   ;;  %v963_v9 = vld [vmem:[%s1367_s1 + $0xa4] ss:$16 sps:$4 sm:$0xff]  }
   0x4   :  { %254 = vmatprep.subr.bf16.mxu0 %v957_v5  ;;  %297 = vmatprep.subr.bf16.mxu1 %v959_v6  ;;  %v965_v10 = vld [vmem:[%s1367_s1 + $0xac] ss:$16 sps:$4 sm:$0xff]   ;;  %v967_v11 = vld [vmem:[%s1367_s1 + $0xa0] ss:$16 sps:$4 sm:$0xff]   ;;  %v968_v12 = vld [vmem:[%s1367_s1 + $0xa8] ss:$16 sps:$4 sm:$0xff]  }
   0x5   :  { %v969_v13 = vld [vmem:[%s1367_s1 + $0x84] ss:$16 sps:$4 sm:$0xff]   ;;  %v971_v14 = vld [vmem:[%s1367_s1 + $0x8c] ss:$16 sps:$4 sm:$0xff]   ;;  %v973_v15 = vld [vmem:[%s1367_s1 + $0x80] ss:$16 sps:$4 sm:$0xff]  }
   0x6   :  { %v974_v16 = vld [vmem:[%s1367_s1 + $0x88] ss:$16 sps:$4 sm:$0xff]   ;;  %v975_v17 = vld [vmem:[%s1367_s1 + $0x64] ss:$16 sps:$4 sm:$0xff]   ;;  %v977_v18 = vld [vmem:[%s1367_s1 + $0x6c] ss:$16 sps:$4 sm:$0xff]  }
   0x7   :  { %255 = vmatpush1.bf16.msra.mxu0 %v961_v7  ;;  %298 = vmatpush1.bf16.msra.mxu1 %v962_v8  ;;  %v979_v19 = vld [vmem:[%s1367_s1 + $0x60] ss:$16 sps:$4 sm:$0xff]   ;;  %v980_v20 = vld [vmem:[%s1367_s1 + $0x68] ss:$16 sps:$4 sm:$0xff]   ;;  %v981_v21 = vld [vmem:[%s1367_s1 + $0x44] ss:$16 sps:$4 sm:$0xff]  }
   0x8   :  { %256 = vmatprep.subr.bf16.mxu0 %v963_v9  ;;  %299 = vmatprep.subr.bf16.mxu1 %v965_v10  ;;  %v983_v22 = vld [vmem:[%s1367_s1 + $0x4c] ss:$16 sps:$4 sm:$0xff]   ;;  %v985_v23 = vld [vmem:[%s1367_s1 + $0x40] ss:$16 sps:$4 sm:$0xff]   ;;  %v986_v24 = vld [vmem:[%s1367_s1 + $0x48] ss:$16 sps:$4 sm:$0xff]  }
   0x9   :  { %v987_v25 = vld [vmem:[%s1367_s1 + $0x24] ss:$16 sps:$4 sm:$0xff]   ;;  %v989_v26 = vld [vmem:[%s1367_s1 + $0x2c] ss:$16 sps:$4 sm:$0xff]   ;;  %v991_v27 = vld [vmem:[%s1367_s1 + $0x20] ss:$16 sps:$4 sm:$0xff]  }
   0xa   :  { %v992_v28 = vld [vmem:[%s1367_s1 + $0x28] ss:$16 sps:$4 sm:$0xff]   ;;  %v993_v29 = vld [vmem:[%s1367_s1 + $0x4] ss:$16 sps:$4 sm:$0xff]   ;;  %v995_v30 = vld [vmem:[%s1367_s1 + $0xc] ss:$16 sps:$4 sm:$0xff]  }
   0xb   :  { %257 = vmatpush1.bf16.msra.mxu0 %v967_v11  ;;  %300 = vmatpush1.bf16.msra.mxu1 %v968_v12  ;;  %v997_v31 = vld [vmem:[%s1367_s1] ss:$16 sps:$4 sm:$0xff]   ;;  %v998_v32 = vld [vmem:[%s1367_s1 + $0x8] ss:$16 sps:$4 sm:$0xff]   ;;  %v67_v3 = vshrl.u32 %v66_v2, 7 }
   0xc   :  { %258 = vmatprep.subr.bf16.mxu0 %v969_v13  ;;  %301 = vmatprep.subr.bf16.mxu1 %v971_v14  ;;  %v999_v33 = vld [vmem:[%s1368_s0] sm:$0xff]   ;;  %v1000_v34 = vld [vmem:[%s1369_s3 + $0x78] sm:$0xff]   ;;  %v1004_v38 = vld [vmem:[%s1369_s3 + $0x70] sm:$0xff]  }
   0xd   :  { %v1001_v35 = vld [vmem:[%s1369_s3 + $0xf8] sm:$0xff]   ;;  %v1005_v39 = vld [vmem:[%s1369_s3 + $0xf0] sm:$0xff]   ;;  %v1008_v42 = vld [vmem:[%s1369_s3 + $0x68] sm:$0xff]   ;;  %v68_v4 = vsub.s32 0, %v67_v3  ;;  %v76_v5 = vsub.s32 2, %v67_v3  ;;  %v72_v7 = vsub.s32 1, %v67_v3 }
   0xe   :  { %v1002_v36 = vld [vmem:[%s1369_s3 + $0x38] sm:$0xff]   ;;  %v1006_v40 = vld [vmem:[%s1369_s3 + $0x30] sm:$0xff]   ;;  %v1009_v43 = vld [vmem:[%s1369_s3 + $0xe8] sm:$0xff]   ;;  %v80_v8 = vsub.s32 3, %v67_v3 }
   0xf   :  { %259 = vmatpush1.bf16.msra.mxu0 %v973_v15  ;;  %302 = vmatpush1.bf16.msra.mxu1 %v974_v16  ;;  %v1003_v37 = vld [vmem:[%s1369_s3 + $0xb8] sm:$0xff]   ;;  %v1007_v41 = vld [vmem:[%s1369_s3 + $0xb0] sm:$0xff]   ;;  %v1010_v44 = vld [vmem:[%s1369_s3 + $0x28] sm:$0xff]  }
  0x10   :  { %260 = vmatprep.subr.bf16.mxu0 %v975_v17  ;;  %303 = vmatprep.subr.bf16.mxu1 %v977_v18  ;;  %v1011_v45 = vld [vmem:[%s1369_s3 + $0xa8] sm:$0xff]   ;;  %v1012_v46 = vld [vmem:[%s1369_s3 + $0x60] sm:$0xff]   ;;  %v1016_v50 = vld [vmem:[%s1369_s3 + $0x58] sm:$0xff]  }
  0x11   :  { %v1013_v47 = vld [vmem:[%s1369_s3 + $0xe0] sm:$0xff]   ;;  %v1017_v51 = vld [vmem:[%s1369_s3 + $0xd8] sm:$0xff]   ;;  %v1020_v54 = vld [vmem:[%s1369_s3 + $0x50] sm:$0xff]  }
  0x12   :  { %v1014_v48 = vld [vmem:[%s1369_s3 + $0x20] sm:$0xff]   ;;  %v1018_v52 = vld [vmem:[%s1369_s3 + $0x18] sm:$0xff]   ;;  %v1021_v55 = vld [vmem:[%s1369_s3 + $0xd0] sm:$0xff]  }
  0x13   :  { %261 = vmatpush1.bf16.msra.mxu0 %v979_v19  ;;  %304 = vmatpush1.bf16.msra.mxu1 %v980_v20  ;;  %v1015_v49 = vld [vmem:[%s1369_s3 + $0xa0] sm:$0xff]   ;;  %v1019_v53 = vld [vmem:[%s1369_s3 + $0x98] sm:$0xff]   ;;  %v1022_v56 = vld [vmem:[%s1369_s3 + $0x10] sm:$0xff]  }
  0x14   :  { %262 = vmatprep.subr.bf16.mxu0 %v981_v21  ;;  %305 = vmatprep.subr.bf16.mxu1 %v983_v22  ;;  %v1023_v57 = vld [vmem:[%s1369_s3 + $0x90] sm:$0xff]   ;;  %v1024_v58 = vld [vmem:[%s1369_s3 + $0x48] sm:$0xff]   ;;  %v1028_v62 = vld [vmem:[%s1369_s3 + $0x40] sm:$0xff]  }
  0x15   :  { %v1025_v59 = vld [vmem:[%s1369_s3 + $0xc8] sm:$0xff]   ;;  %v1029_v63 = vld [vmem:[%s1369_s3 + $0xc0] sm:$0xff]  }
  0x16   :  { %v1026_v60 = vld [vmem:[%s1369_s3 + $0x8] sm:$0xff]   ;;  %v1030_v0 = vld [vmem:[%s1369_s3] sm:$0xff]  }
  0x17   :  { %263 = vmatpush1.bf16.msra.mxu0 %v985_v23  ;;  %306 = vmatpush1.bf16.msra.mxu1 %v986_v24  ;;  %v1027_v61 = vld [vmem:[%s1369_s3 + $0x88] sm:$0xff]   ;;  %v1031_v1 = vld [vmem:[%s1369_s3 + $0x80] sm:$0xff]  }
  0x18   :  { %264 = vmatprep.subr.bf16.mxu0 %v987_v25  ;;  %307 = vmatprep.subr.bf16.mxu1 %v989_v26  ;;  %v64_v6 = vld [vmem:[%s1370_s2] sm:$0xf] }
  0x19   :  { %v69_v9 = vrot.slane %v64_v6, %v68_v4  ;;  %v77_v10 = vrot.slane %v64_v6, %v76_v5  ;;  %v73_v11 = vrot.slane %v64_v6, %v72_v7  ;;  %v81_v12 = vrot.slane %v64_v6, %v80_v8 }
  0x1b   :  { %265 = vmatpush1.bf16.msra.mxu0 %v991_v27  ;;  %308 = vmatpush1.bf16.msra.mxu1 %v992_v28 }
  0x1c   :  { %266 = vmatprep.subr.bf16.mxu0 %v993_v29  ;;  %309 = vmatprep.subr.bf16.mxu1 %v995_v30 }
  0x1f   :  { %267 = vmatpush1.bf16.msra.mxu0 %v997_v31  ;;  %310 = vmatpush1.bf16.msra.mxu1 %v998_v32 }
  0x20   :  { %906 = vmatprep.subr.bf16.mxu0 %v1000_v34  ;;  %928 = vmatprep.subr.bf16.mxu1 %v1001_v35 }
  0x22   :  { %285 = vmatmul.mubr.bf16.vlgmr.msra.gmra.mxu0 %v999_v33  ;;  %328 = vmatmul.mubr.bf16.vlgmr.msra.gmra.mxu1 %v999_v33 }
  0x23   :  { %907 = vmatpush3.bf16.msra.mxu0 %v1002_v36  ;;  %929 = vmatpush3.bf16.msra.mxu1 %v1003_v37 }
  0x24   :  { %908 = vmatprep.subr.bf16.mxu0 %v1004_v38  ;;  %930 = vmatprep.subr.bf16.mxu1 %v1005_v39 }
  0x27   :  { %909 = vmatpush3.bf16.msra.mxu0 %v1006_v40  ;;  %931 = vmatpush3.bf16.msra.mxu1 %v1007_v41 }
  0x28   :  { %910 = vmatprep.subr.bf16.mxu0 %v1008_v42  ;;  %932 = vmatprep.subr.bf16.mxu1 %v1009_v43 }
  0x2b   :  { %911 = vmatpush3.bf16.msra.mxu0 %v1010_v44  ;;  %933 = vmatpush3.bf16.msra.mxu1 %v1011_v45 }
  0x2c   :  { %912 = vmatprep.subr.bf16.mxu0 %v1012_v46  ;;  %934 = vmatprep.subr.bf16.mxu1 %v1013_v47 }
  0x2f   :  { %913 = vmatpush3.bf16.msra.mxu0 %v1014_v48  ;;  %935 = vmatpush3.bf16.msra.mxu1 %v1015_v49 }
  0x30   :  { %914 = vmatprep.subr.bf16.mxu0 %v1016_v50  ;;  %936 = vmatprep.subr.bf16.mxu1 %v1017_v51 }
  0x33   :  { %915 = vmatpush3.bf16.msra.mxu0 %v1018_v52  ;;  %937 = vmatpush3.bf16.msra.mxu1 %v1019_v53 }
  0x34   :  { %916 = vmatprep.subr.bf16.mxu0 %v1020_v54  ;;  %938 = vmatprep.subr.bf16.mxu1 %v1021_v55 }
  0x37   :  { %917 = vmatpush3.bf16.msra.mxu0 %v1022_v56  ;;  %939 = vmatpush3.bf16.msra.mxu1 %v1023_v57 }
  0x38   :  { %918 = vmatprep.subr.bf16.mxu0 %v1024_v58  ;;  %940 = vmatprep.subr.bf16.mxu1 %v1025_v59 }
  0x3b   :  { %919 = vmatpush3.bf16.msra.mxu0 %v1026_v60  ;;  %941 = vmatpush3.bf16.msra.mxu1 %v1027_v61 }
  0x3c   :  { %920 = vmatprep.subr.bf16.mxu0 %v1028_v62  ;;  %942 = vmatprep.subr.bf16.mxu1 %v1029_v63 }
  0x3f   :  { %921 = vmatpush3.bf16.msra.mxu0 %v1030_v0  ;;  %943 = vmatpush3.bf16.msra.mxu1 %v1031_v1 }
  0xe2   :  { %v286_v13 = vpop.f32.mrf.mxu0  ;;  %v329_v14 = vpop.f32.mrf.mxu1 }
  0xe3   :  { %v1296_v15 = vadd.f32 %v286_v13, %v69_v9  ;;  %v1298_v16 = vadd.f32 %v329_v14, %v77_v10 }
  0xe4   :  { %v288_v17 = vpop.f32.mrf.mxu0  ;;  %v331_v18 = vpop.f32.mrf.mxu1 }
  0xe5   :  { %v338_v19 = vmul.f32 %v1296_v15, %v1296_v15  ;;  %v340_v20 = vmul.f32 %v1298_v16, %v1298_v16  ;;  %v1304_v21 = vadd.f32 %v288_v17, %v73_v11  ;;  %v1306_v22 = vadd.f32 %v331_v18, %v81_v12 }
  0xe6   :  { %v290_v23 = vpop.f32.mrf.mxu0  ;;  %v333_v24 = vpop.f32.mrf.mxu1 }
  0xe7   :  { %v346_v25 = vmul.f32 %v338_v19, %v1296_v15  ;;  %v348_v26 = vmul.f32 %v340_v20, %v1298_v16  ;;  %v339_v27 = vmul.f32 %v1304_v21, %v1304_v21  ;;  %v341_v28 = vmul.f32 %v1306_v22, %v1306_v22 }
  0xe8   :  { %v1314_v29 = vadd.f32 %v290_v23, %v69_v9  ;;  %v1316_v30 = vadd.f32 %v333_v24, %v77_v10  ;;  %v292_v31 = vpop.f32.mrf.mxu0  ;;  %v335_v32 = vpop.f32.mrf.mxu1 }
  0xe9   :  { %v354_v33 = vmul.f32 0.044715, %v346_v25  ;;  %v356_v34 = vmul.f32 0.044715, %v348_v26  ;;  %v347_v35 = vmul.f32 %v339_v27, %v1304_v21  ;;  %v349_v36 = vmul.f32 %v341_v28, %v1306_v22 }
  0xea   :  { %v342_v37 = vmul.f32 %v1314_v29, %v1314_v29  ;;  %v344_v38 = vmul.f32 %v1316_v30, %v1316_v30  ;;  %v1324_v39 = vadd.f32 %v292_v31, %v73_v11  ;;  %v1326_v40 = vadd.f32 %v335_v32, %v81_v12 }
  0xeb   :  { %v362_v41 = vadd.f32 %v354_v33, %v1296_v15  ;;  %v364_v42 = vadd.f32 %v356_v34, %v1298_v16  ;;  %v355_v43 = vmul.f32 0.044715, %v347_v35  ;;  %v357_v44 = vmul.f32 0.044715, %v349_v36 }
  0xec   :  { %v350_v45 = vmul.f32 %v342_v37, %v1314_v29  ;;  %v352_v46 = vmul.f32 %v344_v38, %v1316_v30  ;;  %v343_v47 = vmul.f32 %v1324_v39, %v1324_v39  ;;  %v345_v48 = vmul.f32 %v1326_v40, %v1326_v40 }
  0xed   :  { %v370_v49 = vmul.f32 0.7978846, %v362_v41  ;;  %v372_v50 = vmul.f32 0.7978846, %v364_v42  ;;  %v363_v51 = vadd.f32 %v355_v43, %v1304_v21  ;;  %v365_v52 = vadd.f32 %v357_v44, %v1306_v22 }
  0xee   :  { %v358_v53 = vmul.f32 0.044715, %v350_v45  ;;  %v360_v54 = vmul.f32 0.044715, %v352_v46  ;;  %v351_v55 = vmul.f32 %v343_v47, %v1324_v39  ;;  %v353_v56 = vmul.f32 %v345_v48, %v1326_v40 }
  0xef   :  { %1032 = vtanh.f32 %v370_v49  ;;  %v371_v57 = vmul.f32 0.7978846, %v363_v51  ;;  %v373_v58 = vmul.f32 0.7978846, %v365_v52 }
  0xf0   :  { %1034 = vtanh.f32 %v372_v50  ;;  %v366_v59 = vadd.f32 %v358_v53, %v1314_v29  ;;  %v368_v60 = vadd.f32 %v360_v54, %v1316_v30  ;;  %v359_v61 = vmul.f32 0.044715, %v351_v55 }
  0xf1   :  { %1036 = vtanh.f32 %v371_v57  ;;  %v361_v62 = vmul.f32 0.044715, %v353_v56 }
  0xf2   :  { %1038 = vtanh.f32 %v373_v58  ;;  %v374_v63 = vmul.f32 0.7978846, %v366_v59  ;;  %v376_v0 = vmul.f32 0.7978846, %v368_v60  ;;  %v367_v1 = vadd.f32 %v359_v61, %v1324_v39 }
  0xf3   :  { %v369_v2 = vadd.f32 %v361_v62, %v1326_v40 }
  0xf4   :  { %1040 = vtanh.f32 %v374_v63  ;;  %v375_v3 = vmul.f32 0.7978846, %v367_v1 }
  0xf5   :  { %1042 = vtanh.f32 %v376_v0  ;;  %v377_v4 = vmul.f32 0.7978846, %v369_v2 }
  0xf6   :  { %1044 = vtanh.f32 %v375_v3 }
  0xf7   :  { %1046 = vtanh.f32 %v377_v4 }
  0xfc   :  { %v1033_v5 = vpop.eup %1032 }
  0xfd   :  { %v1035_v6 = vpop.eup %1034  ;;  %v386_v11 = vadd.f32 1.0, %v1033_v5 }
  0xfe   :  { %v1037_v7 = vpop.eup %1036  ;;  %v388_v14 = vadd.f32 1.0, %v1035_v6 }
  0xff   :  { %v1039_v8 = vpop.eup %1038  ;;  %v387_v9 = vadd.f32 1.0, %v1037_v7  ;;  %v394_v26 = vmul.f32 0.5, %v386_v11 }
 0x100   :  { %v389_v12 = vadd.f32 1.0, %v1039_v8  ;;  %v396_v32 = vmul.f32 0.5, %v388_v14 }
 0x101   :  { %v1041_v10 = vpop.eup %1040  ;;  %v395_v25 = vmul.f32 0.5, %v387_v9  ;;  %v402_v41 = vmul.f32 %v394_v26, %v1296_v15  ;;  %v858_v15 = vld [vmem:[%s1371_s4] ss:$0 sm:$0xff] }
 0x102   :  { %v1043_v13 = vpop.eup %1042  ;;  %v390_v17 = vadd.f32 1.0, %v1041_v10  ;;  %v397_v31 = vmul.f32 0.5, %v389_v12  ;;  %v404_v44 = vmul.f32 %v396_v32, %v1298_v16 }
 0x103   :  { %v1045_v18 = vpop.eup %1044  ;;  %v392_v19 = vadd.f32 1.0, %v1043_v13  ;;  %v403_v37 = vmul.f32 %v395_v25, %v1304_v21 }
 0x104   :  { %v1047_v20 = vpop.eup %1046  ;;  %v398_v23 = vmul.f32 0.5, %v390_v17  ;;  %v391_v24 = vadd.f32 1.0, %v1045_v18  ;;  %v405_v42 = vmul.f32 %v397_v31, %v1306_v22  ;;  %v898_v22 = vld [vmem:[%s1372_s5] sm:$0xff]  }
 0x105   :  { %v400_v27 = vmul.f32 0.5, %v392_v19  ;;  %v393_v28 = vadd.f32 1.0, %v1047_v20  ;;  %v899_v52 = vunpack.c.l.bf16 %v898_v22  ;;  %v900_v60 = vunpack.c.h.bf16 %v898_v22  ;;  %v892_v31 = vld [vmem:[%s1374_s7] ss:$0 sm:$0xff] }
 0x106   :  { %v399_v33 = vmul.f32 0.5, %v391_v24  ;;  %v406_v34 = vmul.f32 %v398_v23, %v1314_v29  ;;  %v891_v24 = vld [vmem:[%s1373_s6] ss:$0 sm:$0xff] }
 0x107   :  { %v401_v35 = vmul.f32 0.5, %v393_v28  ;;  %v408_v36 = vmul.f32 %v400_v27, %v1316_v30 }
 0x108   :  { %v407_v38 = vmul.f32 %v399_v33, %v1324_v39  ;;  %v410_v47 = vpack.c.bf16 %v406_v34, %v402_v41 }
 0x109   :  { %v409_v43 = vmul.f32 %v401_v35, %v1326_v40  ;;  %v412_v29 = vpack.c.bf16 %v408_v36, %v404_v44 }
 0x10a   :  { %v411_v45 = vpack.c.bf16 %v407_v38, %v403_v37 }
 0x10b   :  { %v413_v46 = vpack.c.bf16 %v409_v43, %v405_v42 }
 0x10c   :  { %709 = vmatprep.mubr.bf16.mxu0 %v411_v45 }
 0x10d   :  { %750 = vmatprep.mubr.bf16.mxu1 %v413_v46  ;;  %710 = vmatmul.mubr.bf16.vlgmr.msra.gmra.mxu0 %v410_v47 }
 0x10e   :  { %751 = vmatmul.mubr.bf16.vlgmr.msra.gmra.mxu1 %v412_v29 }
 0x1cd   :  { %v922_v30 = vpop.f32.mrf.mxu0 }
 0x1ce   :  { %v944_v21 = vpop.f32.mrf.mxu1 }
 0x1cf   :  { %v923_v39 = vpop.f32.mrf.mxu0 }
 0x1d0   :  { %v924_v16 = vadd.f32 %v923_v39, %v922_v30  ;;  %v945_v40 = vpop.f32.mrf.mxu1 }
 0x1d1   :  { %v925_v48 = vpop.f32.mrf.mxu0  ;;  %v946_v50 = vadd.f32 %v945_v40, %v944_v21 }
 0x1d2   :  { %v712_v49 = vadd.f32 %v924_v16, %v858_v15  ;;  %v947_v51 = vpop.f32.mrf.mxu1 }
 0x1d3   :  { %v926_v53 = vpop.f32.mrf.mxu0 }
 0x1d4   :  { %v753_v54 = vadd.f32 %v946_v50, %v712_v49  ;;  %v927_v55 = vadd.f32 %v926_v53, %v925_v48  ;;  %v948_v56 = vpop.f32.mrf.mxu1 }
 0x1d5   :  { %v949_v58 = vadd.f32 %v948_v56, %v947_v51 }
 0x1d6   :  { %v715_v57 = vadd.f32 %v927_v55, %v858_v15  ;;  %v763_v59 = vadd.f32 %v899_v52, %v753_v54 }
 0x1d8   :  { %v756_v61 = vadd.f32 %v949_v58, %v715_v57  ;;  %767 = vadd.xlane.f32.xlu0 %v763_v59  ;;  %v773_v62 = vmul.f32 %v763_v59, %v763_v59 }
 0x1da   :  { %775 = vadd.xlane.f32.xlu1 %v773_v62  ;;  %v764_v63 = vadd.f32 %v900_v60, %v756_v61 }
 0x1dc   :  { %769 = vadd.xlane.f32.xlu0 %v764_v63  ;;  %v774_v0 = vmul.f32 %v764_v63, %v764_v63 }
 0x1de   :  { %777 = vadd.xlane.f32.xlu1 %v774_v0 }
 0x261   :  { %v768_v1 = vpop.xlane.xlu0 %767 }
 0x262   :  { %v771_v2 = vmul.f32 0.0078125, %v768_v1 }
 0x263   :  { %v776_v3 = vpop.xlane.xlu1 %775 }
 0x264   :  { %v781_v4 = vmul.f32 %v771_v2, %v771_v2  ;;  %v779_v5 = vmul.f32 0.0078125, %v776_v3  ;;  %v787_v19 = vsub.f32 %v763_v59, %v771_v2 }
 0x265   :  { %v770_v6 = vpop.xlane.xlu0 %769 }
 0x266   :  { %v783_v7 = vsub.f32 %v779_v5, %v781_v4  ;;  %v772_v8 = vmul.f32 0.0078125, %v770_v6 }
 0x267   :  { %v778_v9 = vpop.xlane.xlu1 %777 }
 0x268   :  { %v785_v10 = vmax.f32 %v783_v7, 0.0  ;;  %v782_v11 = vmul.f32 %v772_v8, %v772_v8  ;;  %v780_v12 = vmul.f32 0.0078125, %v778_v9  ;;  %v788_v25 = vsub.f32 %v764_v63, %v772_v8 }
 0x26a   :  { %v789_v13 = vadd.f32 1e-12, %v785_v10  ;;  %v784_v14 = vsub.f32 %v780_v12, %v782_v11 }
 0x26c   :  { %1048 = vrsqrt.f32 %v789_v13  ;;  %v786_v17 = vmax.f32 %v784_v14, 0.0 }
 0x26e   :  { %v790_v18 = vadd.f32 1e-12, %v786_v17 }
 0x270   :  { %1050 = vrsqrt.f32 %v790_v18 }
 0x279   :  { %v1049_v20 = vpop.eup %1048 }
 0x27a   :  { %v793_v23 = vmul.f32 %v1049_v20, %v787_v19 }
 0x27c   :  { %v801_v27 = vmul.f32 %v891_v24, %v793_v23 }
 0x27d   :  { %v1051_v26 = vpop.eup %1050 }
 0x27e   :  { %v794_v28 = vmul.f32 %v1051_v26, %v788_v25  ;;  %v809_v33 = vadd.f32 %v892_v31, %v801_v27 }
 0x280   :  { %v802_v32 = vmul.f32 %v891_v24, %v794_v28 }
 0x282   :  { %v810_v34 = vadd.f32 %v892_v31, %v802_v32 }
 0x284   :  { %v904_v35 = vpack.c.bf16 %v810_v34, %v809_v33 }
 0x286   :  { %905 = vst [vmem:[%s1375_s8] sm:$0xff] %v904_v35  }

</bundles_post_ra>
